<compile_context>
chip_gen: v5e
topology: v5e:2x2
jax: 0.10.0
libtpu: 0.0.40
codegen_flags: <defaults>
</compile_context>

<pallas_src>
import functools

import numpy as np
import jax
import jax.numpy as jnp
from jax.experimental import pallas as pl
from jax.experimental.pallas import tpu as pltpu


# ------------------------------------------------------------------ kernel ---


def _window_attention_kernel(*refs, num_heads, has_mask):
    """Fused window attention for a block of windows.

    refs (in order):
      x_ref:     (Bb, N, C)    input windows
      wqkv_ref:  (C, 3C)       fused qkv weight, (in, out), bf16, Q-scale pre-folded
      bqkv_ref:  (1, 3C)       f32
      wproj_ref: (C, C)        output projection, (in, out), bf16
      bproj_ref: (1, C)        f32
      bias_ref:  (nh, N, N)    relative-position bias (constant block)
      [mask_ref: (Bb, N, N)]   per-window additive mask (only when has_mask)
      o_ref:     (Bb, N, C)
      ctx_ref:   (Bb*N, C)     bf16 VMEM scratch for the packed per-head context
    """
    if has_mask:
        (x_ref, wqkv_ref, bqkv_ref, wproj_ref, bproj_ref,
         bias_ref, mask_ref, o_ref, ctx_ref) = refs
    else:
        (x_ref, wqkv_ref, bqkv_ref, wproj_ref, bproj_ref,
         bias_ref, o_ref, ctx_ref) = refs
        mask_ref = None

    Bb, N, C = x_ref.shape
    nh = num_heads
    hd = C // nh

    # ---- fused QKV projection: one (Bb*N, C) x (C, 3C) MXU pass, bf16 in / f32 acc.
    #      (qk scale is already folded into the Q columns of wqkv/bqkv at init time.)
    x2 = x_ref[...].reshape(Bb * N, C).astype(jnp.bfloat16)
    qkv = jnp.dot(x2, wqkv_ref[...], preferred_element_type=jnp.float32)
    qkv = qkv + bqkv_ref[...].astype(jnp.float32)                 # (Bb*N, 3C)
    qkv = qkv.reshape(Bb, N, 3 * C).astype(jnp.bfloat16)

    # ---- gather heads into ONE batched layout (nh*Bb, N, hd) (head-major batch).
    #      torch qkv column order is [which(3), head, hd]; static lane slices +
    #      leading-axis concat only (no unsupported major<->minor transposes).
    q = jnp.concatenate([qkv[:, :, h * hd:(h + 1) * hd] for h in range(nh)], axis=0)
    k = jnp.concatenate([qkv[:, :, C + h * hd:C + (h + 1) * hd] for h in range(nh)], axis=0)
    v = jnp.concatenate([qkv[:, :, 2 * C + h * hd:2 * C + (h + 1) * hd] for h in range(nh)], axis=0)

    # ---- batched-head attention scores + rel-pos bias (+ window mask), ONE softmax.
    s = jnp.einsum('bqd,bkd->bqk', q, k,
                   preferred_element_type=jnp.float32)            # (nh*Bb, N, N)
    s = s.reshape(nh, Bb, N, N)
    s = s + bias_ref[...].astype(jnp.float32)[:, None]            # (nh, 1, N, N) broadcast
    if has_mask:
        s = s + mask_ref[...].astype(jnp.float32)[None]           # (1, Bb, N, N) broadcast

    s = s - jnp.max(s, axis=-1, keepdims=True)                    # f32 softmax math
    p = jnp.exp(s)
    # NOTE: approx reciprocal (EUP slot) ~2^-12 rel error; use approx=False for bit parity.
    p = p * pl.reciprocal(jnp.sum(p, axis=-1, keepdims=True), approx=True)
    p = p.reshape(nh * Bb, N, N).astype(jnp.bfloat16)

    # ---- batched-head context, then pack heads along the channel axis into scratch.
    ctx = jnp.einsum('bqk,bkd->bqd', p, v,
                     preferred_element_type=jnp.float32)          # (nh*Bb, N, hd)
    ctx = ctx.astype(jnp.bfloat16)
    for h in range(nh):                                           # static unroll: lane-slice stores
        ctx_ref[:, h * hd:(h + 1) * hd] = ctx[h * Bb:(h + 1) * Bb].reshape(Bb * N, hd)

    # ---- ONE full-K output projection (K = C) + bias.
    out = jnp.dot(ctx_ref[...], wproj_ref[...], preferred_element_type=jnp.float32)
    out = out + bproj_ref[...].astype(jnp.float32)
    o_ref[...] = out.reshape(Bb, N, C).astype(o_ref.dtype)


# ----------------------------------------------------------------- wrapper ---


def _pick_block_b(B_, N, nW=None, max_block_tokens=1024):
    """Largest divisor of B_ such that:
      - the batch grid has >= 2 steps whenever B_ >= 2 (keeps both v7x TensorCores busy),
      - block_b * N <= max_block_tokens (VMEM-friendly; at real Swin sizes this still
        gives an M dim >= 256 for the v6e/v7x 256-wide MXU),
      - the window mask can be block-indexed (block_b | nW or nW | block_b)."""
    best = 1
    for d in range(1, B_ + 1):
        if B_ % d:
            continue
        if nW is not None and (d % nW) and (nW % d):
            continue
        if d * N > max_block_tokens:
            continue
        if B_ >= 2 and B_ // d < 2:
            continue
        best = d
    return best


def window_attention(x, params, *, num_heads, mask=None, block_b=None):
    """x: (num_windows*B, N, C) with the window index fastest (PyTorch window_partition
    layout); mask: (nW, N, N) additive (0 / -inf-style) or None."""
    B_, N, C = x.shape
    assert C % num_heads == 0
    nh = num_heads
    nW = None if mask is None else mask.shape[0]

    if block_b is None:
        block_b = _pick_block_b(B_, N, nW)
    assert B_ % block_b == 0
    grid = (B_ // block_b,)

    in_specs = [
        pl.BlockSpec((block_b, N, C), lambda b: (b, 0, 0)),
        pl.BlockSpec((C, 3 * C), lambda b: (0, 0)),      # constant blocks -> DMA'd once
        pl.BlockSpec((1, 3 * C), lambda b: (0, 0)),
        pl.BlockSpec((C, C), lambda b: (0, 0)),
        pl.BlockSpec((1, C), lambda b: (0, 0)),
        pl.BlockSpec((nh, N, N), lambda b: (0, 0, 0)),   # rel-pos bias, NOT expanded to B_
    ]
    args = [x, params['wqkv_t'], params['bqkv'], params['wproj_t'], params['bproj'],
            params['rel_bias']]

    has_mask = mask is not None
    if has_mask:
        assert B_ % nW == 0, "x batch must be laid out (B, nW) with window index fastest"
        mask_f = mask.astype(jnp.float32)
        if block_b >= nW:
            assert block_b % nW == 0
            # tiny (block_b, N, N) tile reused at every grid step
            mask_arr = jnp.tile(mask_f, (block_b // nW, 1, 1))
            mask_spec = pl.BlockSpec((block_b, N, N), lambda b: (0, 0, 0))
        else:
            assert nW % block_b == 0
            nblk = nW // block_b
            mask_arr = mask_f                            # keep (nW, N, N); index by window block
            mask_spec = pl.BlockSpec((block_b, N, N), lambda b: (b % nblk, 0, 0))
        in_specs.append(mask_spec)
        args.append(mask_arr)

    kernel = functools.partial(_window_attention_kernel, num_heads=nh, has_mask=has_mask)
    return pl.pallas_call(
        kernel,
        out_shape=jax.ShapeDtypeStruct((B_, N, C), x.dtype),
        grid=grid,
        in_specs=in_specs,
        out_specs=pl.BlockSpec((block_b, N, C), lambda b: (b, 0, 0)),
        scratch_shapes=[pltpu.VMEM((block_b * N, C), jnp.bfloat16)],
        compiler_params=pltpu.CompilerParams(
            dimension_semantics=("parallel",)),   # shards the batch grid across v7x's 2 TCs
        # NOTE: for very large C on v7x, additionally set vmem_limit_bytes here.
    )(*args)


# -------------------------------------------------------------- param init ---


def init_params(key, dim, window_size, num_heads, qkv_bias=True, qk_scale=None):
    """Parameters in kernel-friendly layout: (in, out) bf16 weights, qk scale folded into
    the Q section, relative-position bias gathered/permuted once at init."""
    Wh, Ww = window_size
    N = Wh * Ww
    hd = dim // num_heads
    scale = qk_scale if qk_scale is not None else hd ** (-0.5)
    k1, k2, k3 = jax.random.split(key, 3)

    wqkv = jax.random.normal(k1, (3 * dim, dim), jnp.float32) * 0.02   # torch (out, in)
    bqkv = jnp.zeros((3 * dim,), jnp.float32)                          # used iff qkv_bias
    wproj = jax.random.normal(k2, (dim, dim), jnp.float32) * 0.02
    bproj = jnp.zeros((dim,), jnp.float32)
    # TODO(synk): trunc_normal_(std=0.02) approximated with a plain normal*0.02
    table = jax.random.normal(k3, ((2 * Wh - 1) * (2 * Ww - 1), num_heads), jnp.float32) * 0.02

    # fold qk scale into the Q out-features (weight AND bias): torch does (xWq^T+bq)*scale
    wqkv = wqkv.at[:dim].multiply(scale)
    bqkv = bqkv.at[:dim].multiply(scale)
    if not qkv_bias:
        bqkv = jnp.zeros_like(bqkv)

    # relative_position_index — identical construction to the PyTorch __init__ (static)
    coords = np.stack(np.meshgrid(np.arange(Wh), np.arange(Ww), indexing='ij'))  # (2, Wh, Ww)
    coords_flatten = coords.reshape(2, -1)                                       # (2, N)
    rel = coords_flatten[:, :, None] - coords_flatten[:, None, :]                # (2, N, N)
    rel = rel.transpose(1, 2, 0).copy()                                          # (N, N, 2)
    rel[:, :, 0] += Wh - 1
    rel[:, :, 1] += Ww - 1
    rel[:, :, 0] *= 2 * Ww - 1
    rel_index = rel.sum(-1)                                                      # (N, N)

    # gather + permute once, at init (kept out of the forward hot path)
    rel_bias = jnp.take(table, jnp.asarray(rel_index.reshape(-1), jnp.int32), axis=0)
    rel_bias = rel_bias.reshape(N, N, num_heads).transpose(2, 0, 1)              # (nh, N, N)

    return {
        'wqkv_t': wqkv.T.astype(jnp.bfloat16),    # (dim, 3*dim) (in, out), bf16 MXU operand
        'bqkv': bqkv.reshape(1, 3 * dim),         # f32 (added after f32 accumulation)
        'wproj_t': wproj.T.astype(jnp.bfloat16),  # (dim, dim)   (in, out)
        'bproj': bproj.reshape(1, dim),
        'rel_bias': rel_bias.astype(jnp.float32), # (nh, N, N)
    }


# --------------------------------------------------------------------- main --

if __name__ == "__main__":
    DIM, WIN, NH = 32, (4, 4), 4          # dim, window_size, num_heads
    B, nW = 2, 4                          # batch, windows per image
    N = WIN[0] * WIN[1]                   # tokens per window = 16
    B_ = B * nW                           # num_windows * B = 8

    key = jax.random.PRNGKey(0)
    kx, kp, km = jax.random.split(key, 3)
    x = jax.random.normal(kx, (B_, N, DIM), jnp.float32)
    params = init_params(kp, DIM, WIN, NH)

    fwd = jax.jit(functools.partial(window_attention, num_heads=NH))

    # non-shifted path (mask=None)
    out = jax.block_until_ready(fwd(x, params))
    assert out.shape == (B_, N, DIM), out.shape
    assert bool(jnp.all(jnp.isfinite(out)))

    # shifted-window path: additive 0 / -100 mask per window (no fully-masked rows)
    mask = jnp.where(jax.random.uniform(km, (nW, N, N)) < 0.3, -100.0, 0.0).astype(jnp.float32)
    mask = mask.at[:, :, 0].set(0.0)
    out_m = jax.block_until_ready(fwd(x, params, mask=mask))
    assert out_m.shape == (B_, N, DIM), out_m.shape
    assert bool(jnp.all(jnp.isfinite(out_m)))

    # TODO(synk): attn_drop / proj_drop are identity (eval mode).
    print("KERNEL_OK")
</pallas_src>

<mosaic_0001>
module attributes {stable_mosaic.version = 11 : i64} {
  func.func @_window_attention_kernel(%arg0: i32, %arg1: memref<4x16x32xf32, #tpu.memory_space<vmem>>, %arg2: memref<32x96xbf16, #tpu.memory_space<vmem>>, %arg3: memref<1x96xf32, #tpu.memory_space<vmem>>, %arg4: memref<32x32xbf16, #tpu.memory_space<vmem>>, %arg5: memref<1x32xf32, #tpu.memory_space<vmem>>, %arg6: memref<4x16x16xf32, #tpu.memory_space<vmem>>, %arg7: memref<4x16x32xf32, #tpu.memory_space<vmem>>, %arg8: memref<64x32xbf16, #tpu.memory_space<vmem>>) attributes {dimension_semantics = [#tpu.dimension_semantics<parallel>], iteration_bounds = array<i64: 2>, scalar_prefetch = 0 : i64, scratch_operands = 1 : i64, tpu.core_type = #tpu.core_type<tc>, window_params = [{transform_indices = @transform_0, window_bounds = array<i64: 4, 16, 32>}, {pipeline_mode = #tpu.pipeline_mode<synchronous>, transform_indices = @transform_1, window_bounds = array<i64: 32, 96>}, {pipeline_mode = #tpu.pipeline_mode<synchronous>, transform_indices = @transform_2, window_bounds = array<i64: 1, 96>}, {pipeline_mode = #tpu.pipeline_mode<synchronous>, transform_indices = @transform_3, window_bounds = array<i64: 32, 32>}, {pipeline_mode = #tpu.pipeline_mode<synchronous>, transform_indices = @transform_4, window_bounds = array<i64: 1, 32>}, {pipeline_mode = #tpu.pipeline_mode<synchronous>, transform_indices = @transform_5, window_bounds = array<i64: 4, 16, 16>}, {transform_indices = @transform_6, window_bounds = array<i64: 4, 16, 32>}]} {
    %c0 = arith.constant 0 : index
    %c0_0 = arith.constant 0 : index
    %c0_1 = arith.constant 0 : index
    %0 = vector.load %arg1[%c0, %c0_0, %c0_1] : memref<4x16x32xf32, #tpu.memory_space<vmem>>, vector<4x16x32xf32>
    %1 = vector.shape_cast %0 : vector<4x16x32xf32> to vector<64x32xf32>
    %2 = arith.truncf %1 : vector<64x32xf32> to vector<64x32xbf16>
    %c0_2 = arith.constant 0 : index
    %c0_3 = arith.constant 0 : index
    %3 = vector.load %arg2[%c0_2, %c0_3] : memref<32x96xbf16, #tpu.memory_space<vmem>>, vector<32x96xbf16>
    %cst = arith.constant dense<0.000000e+00> : vector<64x96xf32>
    %4 = tpu.matmul %2, %3, %cst {dimension_numbers = #tpu.dot_dimension_numbers<[1], [0], [0], [1], [0, 0, 1, 1], [], []>} : vector<64x32xbf16>, vector<32x96xbf16>, vector<64x96xf32> -> vector<64x96xf32>
    %c0_4 = arith.constant 0 : index
    %c0_5 = arith.constant 0 : index
    %5 = vector.load %arg3[%c0_4, %c0_5] : memref<1x96xf32, #tpu.memory_space<vmem>>, vector<1x96xf32>
    %6 = vector.broadcast %5 : vector<1x96xf32> to vector<64x96xf32>
    %7 = arith.addf %4, %6 : vector<64x96xf32>
    %8 = vector.shape_cast %7 : vector<64x96xf32> to vector<4x16x96xf32>
    %9 = arith.truncf %8 : vector<4x16x96xf32> to vector<4x16x96xbf16>
    %10 = vector.extract_strided_slice %9 {offsets = [0, 0, 0], sizes = [4, 16, 8], strides = [1, 1, 1]} : vector<4x16x96xbf16> to vector<4x16x8xbf16>
    %11 = vector.extract_strided_slice %9 {offsets = [0, 0, 8], sizes = [4, 16, 8], strides = [1, 1, 1]} : vector<4x16x96xbf16> to vector<4x16x8xbf16>
    %12 = vector.extract_strided_slice %9 {offsets = [0, 0, 16], sizes = [4, 16, 8], strides = [1, 1, 1]} : vector<4x16x96xbf16> to vector<4x16x8xbf16>
    %13 = vector.extract_strided_slice %9 {offsets = [0, 0, 24], sizes = [4, 16, 8], strides = [1, 1, 1]} : vector<4x16x96xbf16> to vector<4x16x8xbf16>
    %14 = tpu.concatenate %10, %11, %12, %13 in 0 : vector<4x16x8xbf16>, vector<4x16x8xbf16>, vector<4x16x8xbf16>, vector<4x16x8xbf16> -> vector<16x16x8xbf16>
    %15 = vector.extract_strided_slice %9 {offsets = [0, 0, 32], sizes = [4, 16, 8], strides = [1, 1, 1]} : vector<4x16x96xbf16> to vector<4x16x8xbf16>
    %16 = vector.extract_strided_slice %9 {offsets = [0, 0, 40], sizes = [4, 16, 8], strides = [1, 1, 1]} : vector<4x16x96xbf16> to vector<4x16x8xbf16>
    %17 = vector.extract_strided_slice %9 {offsets = [0, 0, 48], sizes = [4, 16, 8], strides = [1, 1, 1]} : vector<4x16x96xbf16> to vector<4x16x8xbf16>
    %18 = vector.extract_strided_slice %9 {offsets = [0, 0, 56], sizes = [4, 16, 8], strides = [1, 1, 1]} : vector<4x16x96xbf16> to vector<4x16x8xbf16>
    %19 = tpu.concatenate %15, %16, %17, %18 in 0 : vector<4x16x8xbf16>, vector<4x16x8xbf16>, vector<4x16x8xbf16>, vector<4x16x8xbf16> -> vector<16x16x8xbf16>
    %20 = vector.extract_strided_slice %9 {offsets = [0, 0, 64], sizes = [4, 16, 8], strides = [1, 1, 1]} : vector<4x16x96xbf16> to vector<4x16x8xbf16>
    %21 = vector.extract_strided_slice %9 {offsets = [0, 0, 72], sizes = [4, 16, 8], strides = [1, 1, 1]} : vector<4x16x96xbf16> to vector<4x16x8xbf16>
    %22 = vector.extract_strided_slice %9 {offsets = [0, 0, 80], sizes = [4, 16, 8], strides = [1, 1, 1]} : vector<4x16x96xbf16> to vector<4x16x8xbf16>
    %23 = vector.extract_strided_slice %9 {offsets = [0, 0, 88], sizes = [4, 16, 8], strides = [1, 1, 1]} : vector<4x16x96xbf16> to vector<4x16x8xbf16>
    %24 = tpu.concatenate %20, %21, %22, %23 in 0 : vector<4x16x8xbf16>, vector<4x16x8xbf16>, vector<4x16x8xbf16>, vector<4x16x8xbf16> -> vector<16x16x8xbf16>
    "tpu.trace_start"() <{level = 10 : i32, message = "bqd,bkd->bqk"}> : () -> ()
    %cst_6 = arith.constant dense<0.000000e+00> : vector<16x16x16xf32>
    %25 = tpu.matmul %14, %19, %cst_6 {dimension_numbers = #tpu.dot_dimension_numbers<[2], [2], [1], [1], [0, 0, 0, 1, 1, 1], [0], [0]>} : vector<16x16x8xbf16>, vector<16x16x8xbf16>, vector<16x16x16xf32> -> vector<16x16x16xf32>
    "tpu.trace_stop"() : () -> ()
    %26 = vector.shape_cast %25 : vector<16x16x16xf32> to vector<4x4x16x16xf32>
    %c0_7 = arith.constant 0 : index
    %c0_8 = arith.constant 0 : index
    %c0_9 = arith.constant 0 : index
    %27 = vector.load %arg6[%c0_7, %c0_8, %c0_9] : memref<4x16x16xf32, #tpu.memory_space<vmem>>, vector<4x16x16xf32>
    %28 = vector.shape_cast %27 : vector<4x16x16xf32> to vector<4x1x16x16xf32>
    %29 = vector.broadcast %28 : vector<4x1x16x16xf32> to vector<4x4x16x16xf32>
    %30 = arith.addf %26, %29 : vector<4x4x16x16xf32>
    %cst_10 = arith.constant dense<0xFF800000> : vector<4x4x16xf32>
    %31 = vector.multi_reduction <maximumf>, %30, %cst_10 [3] : vector<4x4x16x16xf32> to vector<4x4x16xf32>
    %32 = vector.shape_cast %31 : vector<4x4x16xf32> to vector<4x4x16x1xf32>
    %33 = vector.broadcast %32 : vector<4x4x16x1xf32> to vector<4x4x16x16xf32>
    %34 = arith.subf %30, %33 : vector<4x4x16x16xf32>
    %35 = math.exp %34 : vector<4x4x16x16xf32>
    %cst_11 = arith.constant dense<0.000000e+00> : vector<4x4x16xf32>
    %36 = vector.multi_reduction <add>, %35, %cst_11 [3] : vector<4x4x16x16xf32> to vector<4x4x16xf32>
    %37 = vector.shape_cast %36 : vector<4x4x16xf32> to vector<4x4x16x1xf32>
    %38 = tpu.reciprocal %37 {approx = true} : vector<4x4x16x1xf32> -> vector<4x4x16x1xf32>
    %39 = vector.broadcast %38 : vector<4x4x16x1xf32> to vector<4x4x16x16xf32>
    %40 = arith.mulf %35, %39 : vector<4x4x16x16xf32>
    %41 = vector.shape_cast %40 : vector<4x4x16x16xf32> to vector<16x16x16xf32>
    %42 = arith.truncf %41 : vector<16x16x16xf32> to vector<16x16x16xbf16>
    "tpu.trace_start"() <{level = 10 : i32, message = "bqk,bkd->bqd"}> : () -> ()
    %cst_12 = arith.constant dense<0.000000e+00> : vector<16x16x8xf32>
    %43 = tpu.matmul %42, %24, %cst_12 {dimension_numbers = #tpu.dot_dimension_numbers<[2], [1], [1], [2], [0, 0, 0, 1, 1, 2], [0], [0]>} : vector<16x16x16xbf16>, vector<16x16x8xbf16>, vector<16x16x8xf32> -> vector<16x16x8xf32>
    "tpu.trace_stop"() : () -> ()
    %44 = arith.truncf %43 : vector<16x16x8xf32> to vector<16x16x8xbf16>
    %45 = vector.extract_strided_slice %44 {offsets = [0, 0, 0], sizes = [4, 16, 8], strides = [1, 1, 1]} : vector<16x16x8xbf16> to vector<4x16x8xbf16>
    %46 = vector.shape_cast %45 : vector<4x16x8xbf16> to vector<64x8xbf16>
    %c0_13 = arith.constant 0 : index
    %c0_14 = arith.constant 0 : index
    %47 = vector.load %arg8[%c0_13, %c0_14] : memref<64x32xbf16, #tpu.memory_space<vmem>>, vector<64x8xbf16>
    tpu.vector_store %arg8[%c0_13, %c0_14], %46 {strides = array<i32>} : memref<64x32xbf16, #tpu.memory_space<vmem>>, vector<64x8xbf16>,
    %48 = vector.extract_strided_slice %44 {offsets = [4, 0, 0], sizes = [4, 16, 8], strides = [1, 1, 1]} : vector<16x16x8xbf16> to vector<4x16x8xbf16>
    %49 = vector.shape_cast %48 : vector<4x16x8xbf16> to vector<64x8xbf16>
    %c0_15 = arith.constant 0 : index
    %c8 = arith.constant 8 : index
    %50 = vector.load %arg8[%c0_15, %c8] : memref<64x32xbf16, #tpu.memory_space<vmem>>, vector<64x8xbf16>
    tpu.vector_store %arg8[%c0_15, %c8], %49 {strides = array<i32>} : memref<64x32xbf16, #tpu.memory_space<vmem>>, vector<64x8xbf16>,
    %51 = vector.extract_strided_slice %44 {offsets = [8, 0, 0], sizes = [4, 16, 8], strides = [1, 1, 1]} : vector<16x16x8xbf16> to vector<4x16x8xbf16>
    %52 = vector.shape_cast %51 : vector<4x16x8xbf16> to vector<64x8xbf16>
    %c0_16 = arith.constant 0 : index
    %c16 = arith.constant 16 : index
    %53 = vector.load %arg8[%c0_16, %c16] : memref<64x32xbf16, #tpu.memory_space<vmem>>, vector<64x8xbf16>
    tpu.vector_store %arg8[%c0_16, %c16], %52 {strides = array<i32>} : memref<64x32xbf16, #tpu.memory_space<vmem>>, vector<64x8xbf16>,
    %54 = vector.extract_strided_slice %44 {offsets = [12, 0, 0], sizes = [4, 16, 8], strides = [1, 1, 1]} : vector<16x16x8xbf16> to vector<4x16x8xbf16>
    %55 = vector.shape_cast %54 : vector<4x16x8xbf16> to vector<64x8xbf16>
    %c0_17 = arith.constant 0 : index
    %c24 = arith.constant 24 : index
    %56 = vector.load %arg8[%c0_17, %c24] : memref<64x32xbf16, #tpu.memory_space<vmem>>, vector<64x8xbf16>
    tpu.vector_store %arg8[%c0_17, %c24], %55 {strides = array<i32>} : memref<64x32xbf16, #tpu.memory_space<vmem>>, vector<64x8xbf16>,
    %c0_18 = arith.constant 0 : index
    %c0_19 = arith.constant 0 : index
    %57 = vector.load %arg8[%c0_18, %c0_19] : memref<64x32xbf16, #tpu.memory_space<vmem>>, vector<64x32xbf16>
    %c0_20 = arith.constant 0 : index
    %c0_21 = arith.constant 0 : index
    %58 = vector.load %arg4[%c0_20, %c0_21] : memref<32x32xbf16, #tpu.memory_space<vmem>>, vector<32x32xbf16>
    %cst_22 = arith.constant dense<0.000000e+00> : vector<64x32xf32>
    %59 = tpu.matmul %57, %58, %cst_22 {dimension_numbers = #tpu.dot_dimension_numbers<[1], [0], [0], [1], [0, 0, 1, 1], [], []>} : vector<64x32xbf16>, vector<32x32xbf16>, vector<64x32xf32> -> vector<64x32xf32>
    %c0_23 = arith.constant 0 : index
    %c0_24 = arith.constant 0 : index
    %60 = vector.load %arg5[%c0_23, %c0_24] : memref<1x32xf32, #tpu.memory_space<vmem>>, vector<1x32xf32>
    %61 = vector.broadcast %60 : vector<1x32xf32> to vector<64x32xf32>
    %62 = arith.addf %59, %61 : vector<64x32xf32>
    %63 = vector.shape_cast %62 : vector<64x32xf32> to vector<4x16x32xf32>
    %c0_25 = arith.constant 0 : index
    %c0_26 = arith.constant 0 : index
    %c0_27 = arith.constant 0 : index
    %64 = vector.load %arg7[%c0_25, %c0_26, %c0_27] : memref<4x16x32xf32, #tpu.memory_space<vmem>>, vector<4x16x32xf32>
    tpu.vector_store %arg7[%c0_25, %c0_26, %c0_27], %63 {strides = array<i32>} : memref<4x16x32xf32, #tpu.memory_space<vmem>>, vector<4x16x32xf32>,
    return
  }
  func.func @transform_0(%arg0: i32) -> (i32, i32, i32) {
    %c0_i32 = arith.constant 0 : i32
    %c0_i32_0 = arith.constant 0 : i32
    %c0_i32_1 = arith.constant 0 : i32
    return %arg0, %c0_i32, %c0_i32_0 : i32, i32, i32
  }
  func.func @transform_1(%arg0: i32) -> (i32, i32) {
    %c0_i32 = arith.constant 0 : i32
    %c0_i32_0 = arith.constant 0 : i32
    %c0_i32_1 = arith.constant 0 : i32
    return %c0_i32, %c0_i32_0 : i32, i32
  }
  func.func @transform_2(%arg0: i32) -> (i32, i32) {
    %c0_i32 = arith.constant 0 : i32
    %c0_i32_0 = arith.constant 0 : i32
    %c0_i32_1 = arith.constant 0 : i32
    return %c0_i32, %c0_i32_0 : i32, i32
  }
  func.func @transform_3(%arg0: i32) -> (i32, i32) {
    %c0_i32 = arith.constant 0 : i32
    %c0_i32_0 = arith.constant 0 : i32
    %c0_i32_1 = arith.constant 0 : i32
    return %c0_i32, %c0_i32_0 : i32, i32
  }
  func.func @transform_4(%arg0: i32) -> (i32, i32) {
    %c0_i32 = arith.constant 0 : i32
    %c0_i32_0 = arith.constant 0 : i32
    %c0_i32_1 = arith.constant 0 : i32
    return %c0_i32, %c0_i32_0 : i32, i32
  }
  func.func @transform_5(%arg0: i32) -> (i32, i32, i32) {
    %c0_i32 = arith.constant 0 : i32
    %c0_i32_0 = arith.constant 0 : i32
    %c0_i32_1 = arith.constant 0 : i32
    %c0_i32_2 = arith.constant 0 : i32
    return %c0_i32, %c0_i32_0, %c0_i32_1 : i32, i32, i32
  }
  func.func @transform_6(%arg0: i32) -> (i32, i32, i32) {
    %c0_i32 = arith.constant 0 : i32
    %c0_i32_0 = arith.constant 0 : i32
    %c0_i32_1 = arith.constant 0 : i32
    return %arg0, %c0_i32, %c0_i32_0 : i32, i32, i32
  }
}

</mosaic_0001>

<bundles_post_ra>
// kernel: window_attention.1
= control target key start
LH: loop header
LB: loop body
LE: loop exit
PB: predicated region body
PF: predicated region fallthrough
CT: control target
= control target key end

     0   :  { %11 = vsyncpa [#allocation4], 0  ;;  %s3552_s0 = inlined_call_operand.hbm [shape: f32[8,16,32], index: 0, kind: input, shape index: {}]   ;;  %s3553_s1 = inlined_call_operand.hbm [shape: bf16[32,96], index: 1, kind: input, shape index: {}]   ;;  %s3554_s2 = inlined_call_operand.vmem [shape: f32[1,96], index: 2, kind: input, shape index: {}]   ;;  %s3555_s3 = inlined_call_operand.hbm [shape: bf16[32,32], index: 3, kind: input, shape index: {}]   ;;  %s3556_s4 = inlined_call_operand.hbm [shape: f32[1,32], index: 4, kind: input, shape index: {}]   ;;  %s3557_s5 = inlined_call_operand.hbm [shape: f32[4,16,16], index: 5, kind: input, shape index: {}]   ;;  %s3558_s6 = inlined_call_operand.hbm [shape: f32[8,16,32], index: 6, kind: output, shape index: {}]  }
   0x1   :  { %13 = vsyncpa [#allocation4 + $0x1], 0 }
   0x2   :  { %14 = vsyncpa [#allocation7], 0 }
   0x3   :  { %15 = vsyncpa [#allocation10], 0 }
   0x4   :  { %16 = vsyncpa [#allocation5], 0 }
   0x5   :  { %18 = vsyncpa [#allocation5 + $0x1], 0  ;;  %s2715_s21 = smov 0   ;;  %s2717_s22 = smov 0  }
   0x6   :  { %s2719_s23 = smov 0   ;;  %s2721_s24 = smov 0  }
   0x7 LB: > { %s2736_s25 = sadd.s32 4294967295, %s2661_s24   ;;  %s2093_s26 = sadd.s32 4294967294, %s2661_s24   ;;  %s2661_s24 = sphi %s2721_s24, %s3573_s24   ;;  %s2657_s23 = sphi %s2719_s23, %s3572_s23   ;;  %s2653_s22 = sphi %s2717_s22, %s3571_s22   ;;  %s2649_s21 = sphi %s2715_s21, %s3570_s21  }
   0x8   : > { %p44_p0 = scmp.ne.s32.totalorder %s2653_s22, %s2649_s21  ;;  %p45_p1 = scmp.eq.s32.totalorder %s2736_s25, 0 }
   0x9   : > { %p173_p2 = scmp.eq.s32.totalorder %s2736_s25, 1  ;;  %p179_p3 = scmp.eq.s32.totalorder %s2093_s26, 1 }
   0xa   : > { %p2745_p4 = por %p45_p1, %p44_p0  ;;  %p2094_p5 = scmp.ge.s32.totalorder %s2661_s24, 1 }
   0xb   : > { %p2750_p6 = por %p179_p3, %p44_p0  ;;  %p186_p7 = scmp.lt.s32.totalorder %s2661_s24, 3 }
   0xc   : > { %s197_s7 = sshll.u32 %s3553_s1, 4  ;;  %s2663_s9 = smov [#allocation6]   ;;  %s198_s7 = int_to_ptr.hbm [resolvable:$true] %s197_s7 }
   0xd   : > { %p2758_p8 = pnand %p2094_p5, %p186_p7  ;;  %s199_s10 = sshll.u32 %s2663_s9, 4  ;;  %s200_s10 = int_to_ptr.vmem [resolvable:$true] %s199_s10 }
   0xe   : > { %s229_s14 = sshll.u32 %s3556_s4, 4  ;;  %s2664_s15 = smov 64   ;;  %s230_s14 = int_to_ptr.hbm [resolvable:$true] %s229_s14 }
   0xf   : > { %p2227_p9 = pneg %p2758_p8  ;;  %s2665_s16 = smov 4  }
  0x10   : > { %s2666_s17 = smov [#allocation9]   ;;  %s214_s26 = sshll.u32 %s3555_s3, 4  ;;  %s215_s26 = int_to_ptr.hbm [resolvable:$true] %s214_s26 }
  0x11   : > { %p2766_p10 = pnand %p2227_p9, %p45_p1  ;;  %s231_s18 = sshll.u32 %s2666_s17, 4  ;;  %s232_s18 = int_to_ptr.vmem [resolvable:$true] %s231_s18 }
  0x12   : > { %s240_s9 = sshll.u32 %s3557_s5, 4  ;;  %s2668_s12 = smov [#allocation11]   ;;  %s241_s9 = int_to_ptr.hbm [resolvable:$true] %s240_s9 }
  0x13   : > { %2230 = dma.hbm_to_vmem [thread:$0]  (!%p2766_p10), %s198_s7, 256, %s200_s10, [#allocation7], %s2664_s15, %s2664_s15, %s2665_s16  }
  0x14   : > { %2236 = dma.hbm_to_vmem [thread:$0]  (!%p2766_p10), %s230_s14, 16, %s232_s18, [#allocation10]  }
  0x15   : > { %s2667_s7 = smov [#allocation8]   ;;  %s242_s13 = sshll.u32 %s2668_s12, 4  ;;  %s243_s13 = int_to_ptr.vmem [resolvable:$true] %s242_s13 }
  0x16   : > { %s216_s10 = sshll.u32 %s2667_s7, 4  ;;  %s3559_s14 = smov 128   ;;  %s217_s10 = int_to_ptr.vmem [resolvable:$true] %s216_s10 }
  0x17   : > { %2233 = dma.hbm_to_vmem [thread:$0]  (!%p2766_p10), %s215_s26, 256, %s217_s10, [#allocation7], %s2664_s15, %s2664_s15, %s2665_s16  }
  0x18   : > { %s3560_s17 = smov 8   ;;  %s2792_s18 = sadd.s32 1, %s2661_s24  }
  0x19   : > { %2239 = dma.hbm_to_vmem [thread:$0]  (!%p2766_p10), %s241_s9, 1024, %s243_s13, [#allocation10], %s3559_s14, %s3559_s14, %s3560_s17  }
  0x1a   : > { %s28_s19 = ssub.s32 %s2661_s24, %s2792_s18  ;;  %s31_s20 = sadd.s32 1, %s2657_s23 }
  0x1b   : > { %p29_p12 = scmp.eq.s32.totalorder %s28_s19, 0  ;;  %p38_p13 = scmp.ne.s32.totalorder %s2657_s23, %s2653_s22 }
  0x1c   : > { %p39_p0 = scmp.eq.s32.totalorder %s2661_s24, 0  ;;  %p2252_p7 = scmp.lt.s32.totalorder %s2661_s24, 2 }
  0x1d   : > { %s2801_s15 = scalar_select %p29_p12, %s2657_s23, %s31_s20  }
  0x1e   : > { %p40_p3 = por %p39_p0, %p38_p13  ;;  %p2805_p5 = por %p173_p2, %p38_p13 }
  0x1f   : > { %s256_s11 = sand.u32 1, %s2657_s23   ;;  %s2190_s29 = sshll.u32 %s2661_s24, 6 }
  0x20   : > { %s2100_s26 = sshll.u32 %s256_s11, 6  ;;  %s266_s7 = scalar_lea.hbm %s3552_s0, %s2190_s29 }
  0x21   : > { %s260_s10 = scalar_lea.vmem [#allocation3], %s2100_s26  ;;  %s267_s13 = sshll.u32 %s266_s7, 4  ;;  %s268_s13 = int_to_ptr.hbm [resolvable:$true] %s267_s13 }
  0x22   : > { %s269_s12 = sshll.u32 %s260_s10, 4  ;;  %p2815_p9 = pnand %p2252_p7, %p40_p3  ;;  %s270_s12 = int_to_ptr.vmem [resolvable:$true] %s269_s12 }
  0x23   : > { %s257_s20 = scalar_lea.sflag [#allocation4], %s256_s11  ;;  %s2557_s14 = sshra.s32 %s268_s13, 4  ;;  %s2558_s14 = int_to_ptr.hbm [resolvable:$true] %s2557_s14 }
  0x24   : > { %s2559_s17 = scalar_lea.hbm %s2558_s14, 64  ;;  %p2561_p10 = pneg %p2815_p9 }
  0x25   : > { %p2560_p2 = scmp.ne.s32.totalorder %s2558_s14, %s2559_s17  ;;  %s2564_s30 = scalar_lea.hbm %s3552_s0, 128 }
  0x26   : > { %p2565_p0 = scmp.lt.s32.totalorder %s2558_s14, %s3552_s0  ;;  %p2566_p3 = scmp.lt.s32.totalorder %s2564_s30, %s2559_s17 }
  0x27   : > { %p2562_p12 = pnand %p2561_p10, %p2560_p2 }
  0x28   : > { %p2567_p7 = por %p2566_p3, %p2565_p0 }
  0x29   : > { %p2563_p13 = pneg %p2562_p12 }
  0x2b   : > { %p2568_p11 = pnand %p2567_p7, %p2563_p13 }
  0x2d   : > { %2571 = shalt.err (!%p2568_p11)
}
  0x2e   : > { %s3567_s11 = smov 8   ;;  %s3568_s10 = smov 128  }
  0x2f   : > { %2243 = dma.hbm_to_vmem [thread:$0]  (!%p2815_p9), %s268_s13, 1024, %s270_s12, %s257_s20, %s3568_s10, %s3568_s10, %s3567_s11  }
  0x30   : > { %281 = sbr.rel (%p2758_p8) target bundleno = 1456 (0x5b0), region = 44  ;;  %s2835_s29 = sand.u32 (!%p2758_p8), 1, %s2653_s22  }
  0x31   : > { %s2105_s14 = sshll.u32 (!%p2758_p8), %s2835_s29, 6  ;;  %s284_s17 = scalar_lea.sflag (!%p2758_p8), [#allocation4], %s2835_s29 }
  0x32   : > { %s287_s26 = scalar_lea.vmem (!%p2758_p8), [#allocation3], %s2105_s14 }
  0x35   : > { %2632 = dma.done.wait (%p2745_p4), %s284_s17, 1024  }
  0x36   : > { %2634 = vsyncadd (%p2745_p4), %s284_s17, 4294966272 }
  0x37   : > { %2636 = dma.done.wait (%p45_p1), [#allocation7], 512  }
  0x38   : > { %2638 = vsyncadd (%p45_p1), [#allocation7], 4294966784 }
  0x39   : > { %2640 = dma.done.wait (%p45_p1), [#allocation10], 1040  }
  0x3a   : > { %2642 = vsyncadd (%p45_p1), [#allocation10], 4294966256  ;;  %v2192_v0 = vld [vmem:[#allocation6 + $0x8] sm:$0xff]  ;;  %v2191_v1 = vld [vmem:[#allocation6] sm:$0xff]  ;;  %vm372_vm0 = vcmask 261120   ;;  %s2671_s12 = smov 120  }
  0x3b   : > { %v340_v2 = vld [vmem:[%s287_s26] sm:$0xff]  ;;  %v341_v3 = vld [vmem:[%s287_s26 + $0x8] sm:$0xff]  ;;  %v342_v4 = vld [vmem:[%s287_s26 + $0x10] sm:$0xff]  ;;  %391 = vmatpush.bf16.msra.mxu0 %v2192_v0  ;;  %2201 = vmatpush.bf16.msra.mxu1 %v2192_v0  ;;  %s2672_s13 = smov 112   ;;  %s2673_s19 = smov 96   ;;  %vm483_vm1 = vcmask 64512  }
  0x3c   : > { %v343_v5 = vld [vmem:[%s287_s26 + $0x18] sm:$0xff]  ;;  %v346_v6 = vld [vmem:[%s287_s26 + $0x30] sm:$0xff]  ;;  %2203 = vmatpush.bf16.msra.mxu3 %v2192_v0  ;;  %2202 = vmatpush.bf16.msra.mxu2 %v2192_v0  ;;  %v344_v8 = vld [vmem:[%s287_s26 + $0x20] sm:$0xff]  ;;  %v348_v10 = vpack.c.bf16 %v341_v3, %v340_v2  ;;  %s2674_s20 = smov 104   ;;  %s2675_s30 = smov 64   ;;  %vm919_vm2 = vcmask 130048  }
  0x3d   : > { %v347_v7 = vld [vmem:[%s287_s26 + $0x38] sm:$0xff]  ;;  %v345_v9 = vld [vmem:[%s287_s26 + $0x28] sm:$0xff]  ;;  %v349_v11 = vpack.c.bf16 %v343_v5, %v342_v4  ;;  %v2307_v14 = vld [vmem:[%s3554_s2] ss:$0 sm:$0xff]  ;;  %vm1736_vm3 = vcmask 60416   ;;  %s2676_s9 = smov 8  }
  0x3e   : > { %v351_v12 = vpack.c.bf16 %v347_v7, %v346_v6  ;;  %v350_v13 = vpack.c.bf16 %v345_v9, %v344_v8  ;;  %s2677_s7 = smov 16   ;;  %s2678_s11 = smov 24   ;;  %vm1777_vm4 = vcmask 126016   ;;  %vm1818_vm5 = vcmask 191616  }
  0x3f   : > { %392 = vmatpush.bf16.msra.mxu0 %v2191_v1  ;;  %2204 = vmatpush.bf16.msra.mxu1 %v2191_v1  ;;  %vm1859_vm6 = vcmask 257216   ;;  %s336_s10 = scalar_lea.vmem [#allocation12], %s2105_s14  ;;  %s2200_s14 = sshll.u32 %s2736_s25, 6 }
  0x40   : > { %2206 = vmatpush.bf16.msra.mxu3 %v2191_v1  ;;  %2205 = vmatpush.bf16.msra.mxu2 %v2191_v1  ;;  %s1978_s27 = scalar_lea.hbm %s3558_s6, %s2200_s14  ;;  %s1979_s8 = sshll.u32 %s336_s10, 4  ;;  %s1980_s8 = int_to_ptr.vmem [resolvable:$true] %s1979_s8 }
  0x42   : > { %2119 = vmatmul.msk.bf16.vlgmr.msra.gmra.mxu0 %vm372_vm0, %v348_v10  ;;  %2120 = vmatmul.msk.bf16.vlgmr.msra.gmra.mxu1 %vm372_vm0, %v349_v11 }
  0x43   : > { %2122 = vmatmul.msk.bf16.vlgmr.msra.gmra.mxu3 %vm372_vm0, %v351_v12  ;;  %2121 = vmatmul.msk.bf16.vlgmr.msra.gmra.mxu2 %vm372_vm0, %v350_v13 }
  0xbf   : > { %v394_v15 = vpop.f32.mrf.mxu0  ;;  %v399_v16 = vpop.f32.mrf.mxu1 }
  0xc0   : > { %v395_v17 = vadd.f32 %v2307_v14, %v394_v15  ;;  %v400_v18 = vadd.f32 %v2307_v14, %v399_v16 }
  0xc2   : > { %v414_v19 = vpack.c.bf16 %v395_v17, %v395_v17  ;;  %v416_v20 = vpack.c.bf16 %v400_v18, %v400_v18 }
  0xc4   : > { %434 = vrot.lane.b32.xlu1 %v416_v20, %s2671_s12  ;;  %446 = vrot.lane.b32.xlu2 %v414_v19, %s2672_s13  ;;  %v504_v35 = vunpack.c.l.b16 %v416_v20  ;;  %v478_v43 = vunpack.c.l.b16 %v414_v19 }
  0xc5   : > { %430 = vrot.lane.b32.xlu0 %v414_v19, %s2671_s12 }
  0xc6   : > { %v409_v21 = vpop.f32.mrf.mxu3  ;;  %v404_v28 = vpop.f32.mrf.mxu2 }
  0xc7   : > { %v396_v22 = vpop.f32.mrf.mxu0  ;;  %v401_v23 = vpop.f32.mrf.mxu1  ;;  %v410_v24 = vadd.f32 %v2307_v14, %v409_v21  ;;  %v405_v31 = vadd.f32 %v2307_v14, %v404_v28 }
  0xc8   : > { %v397_v25 = vadd.f32 %v2307_v14, %v396_v22  ;;  %v402_v26 = vadd.f32 %v2307_v14, %v401_v23 }
  0xc9   : > { %v2863_v27 = vpack.c.bf16 %v410_v24, %v410_v24  ;;  %v2872_v32 = vpack.c.bf16 %v405_v31, %v405_v31 }
  0xca   : > { %v415_v29 = vpack.c.bf16 %v397_v25, %v397_v25  ;;  %v2865_v30 = vpack.c.bf16 %v402_v26, %v402_v26 }
  0xcb   : > { %v529_v39 = vunpack.c.l.b16 %v2872_v32  ;;  %v554_v48 = vunpack.c.l.b16 %v2863_v27 }
  0xcc   : > { %436 = vrot.lane.b32.xlu1 %v2865_v30, %s2671_s12  ;;  %442 = vrot.lane.b32.xlu2 %v2863_v27, %s2671_s12  ;;  %v505_v36 = vunpack.c.l.b16 %v2865_v30  ;;  %v479_v41 = vunpack.c.l.b16 %v415_v29 }
  0xcd   : > { %432 = vrot.lane.b32.xlu0 %v415_v29, %s2671_s12 }
  0xce   : > { %v406_v33 = vpop.f32.mrf.mxu2  ;;  %v2879_v38 = vpack.c.b16 %v505_v36, %v504_v35  ;;  %v411_v44 = vpop.f32.mrf.mxu3  ;;  %v2889_v45 = vpack.c.b16 %v479_v41, %v478_v43 }
  0xcf   : > { %v407_v34 = vadd.f32 %v2307_v14, %v406_v33  ;;  %v412_v46 = vadd.f32 %v2307_v14, %v411_v44 }
  0xd1   : > { %v419_v37 = vpack.c.bf16 %v407_v34, %v407_v34  ;;  %v2896_v47 = vpack.c.bf16 %v412_v46, %v412_v46 }
  0xd3   : > { %v530_v40 = vunpack.c.l.b16 %v419_v37  ;;  %v555_v49 = vunpack.c.l.b16 %v2896_v47 }
  0xd4   : > { %450 = vrot.lane.b32.xlu1 %v416_v20, %s2672_s13  ;;  %448 = vrot.lane.b32.xlu2 %v415_v29, %s2672_s13 }
  0xd5   : > { %438 = vrot.lane.b32.xlu0 %v2872_v32, %s2671_s12  ;;  %v2887_v42 = vpack.c.b16 %v530_v40, %v529_v39  ;;  %v2907_v50 = vpack.c.b16 %v555_v49, %v554_v48 }
  0xdc   : > { %507 = vrot.lane.b32.xlu1 %v2879_v38, %s2673_s19  ;;  %452 = vrot.lane.b32.xlu2 %v2865_v30, %s2672_s13 }
  0xdd   : > { %462 = vrot.lane.b32.xlu0 %v414_v19, %s2674_s20 }
  0xe4   : > { %440 = vrot.lane.b32.xlu1 %v419_v37, %s2671_s12  ;;  %532 = vrot.lane.b32.xlu2 %v2887_v42, %s2673_s19 }
  0xe5   : > { %481 = vrot.lane.b32.xlu0 %v2889_v45, %s2673_s19 }
  0xec   : > { %464 = vrot.lane.b32.xlu1 %v415_v29, %s2674_s20  ;;  %454 = vrot.lane.b32.xlu2 %v2872_v32, %s2672_s13 }
  0xed   : > { %444 = vrot.lane.b32.xlu0 %v2896_v47, %s2671_s12  ;;  %s1981_s12 = sshll.u32 %s1978_s27, 4  ;;  %s1982_s12 = int_to_ptr.hbm [resolvable:$true] %s1981_s12 }
  0xf4   : > { %466 = vrot.lane.b32.xlu1 %v416_v20, %s2674_s20 }
  0xf5   : > { %456 = vrot.lane.b32.xlu0 %v419_v37, %s2672_s13 }
  0xfd   : > { %557 = vrot.lane.b32.xlu0 %v2907_v50, %s2673_s19 }
 0x105   : > { %458 = vrot.lane.b32.xlu0 %v2863_v27, %s2672_s13 }
 0x10d   : > { %472 = vrot.lane.b32.xlu0 %v419_v37, %s2674_s20 }
 0x11e   : > { %v447_v51 = vpop.permute.xlu2 %446 }
 0x11f   : > { %v679_v9 = vunpack.c.l.b16 %v447_v51 }
 0x126   : > { %v443_v52 = vpop.permute.xlu2 %442 }
 0x127   : > { %v654_v21 = vunpack.c.l.b16 %v443_v52 }
 0x12e   : > { %v449_v53 = vpop.permute.xlu2 %448 }
 0x12f   : > { %v680_v5 = vunpack.c.l.b16 %v449_v53 }
 0x131   : > { %v2930_v10 = vpack.c.b16 %v680_v5, %v679_v9 }
 0x136   : > { %v435_v54 = vpop.permute.xlu1 %434  ;;  %v453_v55 = vpop.permute.xlu2 %452 }
 0x137   : > { %v431_v56 = vpop.permute.xlu0 %430  ;;  %v604_v57 = vunpack.c.l.b16 %v435_v54  ;;  %v705_v28 = vunpack.c.l.b16 %v453_v55 }
 0x138   : > { %v579_v63 = vunpack.c.l.b16 %v431_v56 }
 0x13e   : > { %v437_v58 = vpop.permute.xlu1 %436  ;;  %v533_v59 = vpop.permute.xlu2 %532 }
 0x13f   : > { %v605_v60 = vunpack.c.l.b16 %v437_v58  ;;  %v433_v61 = vpop.permute.xlu0 %432  ;;  %v538_v62 = vsel %vm483_vm1, %v533_v59, 0 }
 0x140   : > { %v580_v0 = vunpack.c.l.b16 %v433_v61  ;;  %547 = vmatpush.bf16.xpose.msrb.mxu3 %v538_v62 }
 0x141   : > { %v2915_v1 = vpack.c.b16 %v605_v60, %v604_v57 }
 0x142   : > { %v2917_v2 = vpack.c.b16 %v580_v0, %v579_v63 }
 0x143   : > { %607 = vrot.lane.b32.xlu2 %v2915_v1, %s2673_s19 }
 0x144   : > { %582 = vrot.lane.b32.xlu1 %v2917_v2, %s2673_s19 }
 0x146   : > { %v451_v3 = vpop.permute.xlu1 %450  ;;  %v455_v25 = vpop.permute.xlu2 %454 }
 0x147   : > { %v439_v4 = vpop.permute.xlu0 %438  ;;  %2125 = vmatmul.msk.bf16.vlgmr.msrb.gmra.mxu3 %vm483_vm1, %v2887_v42  ;;  %v704_v26 = vunpack.c.l.b16 %v451_v3  ;;  %v729_v29 = vunpack.c.l.b16 %v455_v25 }
 0x148   : > { %v629_v11 = vunpack.c.l.b16 %v439_v4 }
 0x149   : > { %v2957_v31 = vpack.c.b16 %v705_v28, %v704_v26 }
 0x14b   : > { %468 = vrot.lane.b32.xlu2 %v2865_v30, %s2674_s20 }
 0x14c   : > { %460 = vrot.lane.b32.xlu1 %v2896_v47, %s2672_s13  ;;  %s1966_s13 = scalar_lea.sflag [#allocation5], %s2835_s29 }
 0x14e   : > { %v508_v6 = vpop.permute.xlu1 %507 }
 0x14f   : > { %v463_v7 = vpop.permute.xlu0 %462  ;;  %v513_v8 = vsel %vm483_vm1, %v508_v6, 0 }
 0x150   : > { %522 = vmatpush.bf16.xpose.msrb.mxu2 %v513_v8  ;;  %v779_v18 = vunpack.c.l.b16 %v463_v7 }
 0x153   : > { %470 = vrot.lane.b32.xlu2 %v2872_v32, %s2674_s20 }
 0x154   : > { %682 = vrot.lane.b32.xlu1 %v2930_v10, %s2673_s19 }
 0x156   : > { %v441_v12 = vpop.permute.xlu1 %440 }
 0x157   : > { %v630_v13 = vunpack.c.l.b16 %v441_v12  ;;  %v482_v14 = vpop.permute.xlu0 %481  ;;  %2124 = vmatmul.msk.bf16.vlgmr.msrb.gmra.mxu2 %vm483_vm1, %v2879_v38 }
 0x158   : > { %v488_v15 = vsel %vm483_vm1, %v482_v14, 0 }
 0x159   : > { %v2939_v16 = vpack.c.b16 %v630_v13, %v629_v11  ;;  %497 = vmatpush.bf16.xpose.msrb.mxu1 %v488_v15  ;;  %v880_v13 = vld [vmem:[#allocation11 + $0x8] sm:$0xff]  ;;  %v879_v15 = vld [vmem:[#allocation11] sm:$0xff] }
 0x15b   : > { %632 = vrot.lane.b32.xlu2 %v2939_v16, %s2673_s19 }
 0x15c   : > { %474 = vrot.lane.b32.xlu1 %v2863_v27, %s2674_s20 }
 0x15e   : > { %v465_v17 = vpop.permute.xlu1 %464 }
 0x15f   : > { %v780_v19 = vunpack.c.l.b16 %v465_v17  ;;  %v445_v20 = vpop.permute.xlu0 %444 }
 0x160   : > { %v655_v22 = vunpack.c.l.b16 %v445_v20  ;;  %2123 = vmatmul.msk.bf16.vlgmr.msrb.gmra.mxu1 %vm483_vm1, %v2889_v45 }
 0x161   : > { %v2947_v23 = vpack.c.b16 %v780_v19, %v779_v18 }
 0x162   : > { %v2949_v24 = vpack.c.b16 %v655_v22, %v654_v21 }
 0x163   : > { %476 = vrot.lane.b32.xlu2 %v2896_v47, %s2674_s20 }
 0x164   : > { %782 = vrot.lane.b32.xlu1 %v2947_v23, %s2673_s19  ;;  %657 = vrot.lane.b32.xlu0 %v2949_v24, %s2673_s19 }
 0x166   : > { %v467_v39 = vpop.permute.xlu1 %466 }
 0x167   : > { %v457_v27 = vpop.permute.xlu0 %456  ;;  %v804_v41 = vunpack.c.l.b16 %v467_v39 }
 0x168   : > { %v730_v30 = vunpack.c.l.b16 %v457_v27 }
 0x16a   : > { %v2959_v32 = vpack.c.b16 %v730_v30, %v729_v29 }
 0x16c   : > { %1309 = vrot.lane.b32.xlu1 %v2889_v45, %s2675_s30  ;;  %707 = vrot.lane.b32.xlu0 %v2957_v31, %s2673_s19 }
 0x16d   : > { %732 = vrot.lane.b32.xlu2 %v2959_v32, %s2673_s19 }
 0x16f   : > { %v558_v33 = vpop.permute.xlu0 %557 }
 0x170   : > { %v563_v34 = vsel %vm483_vm1, %v558_v33, 0 }
 0x171   : > { %572 = vmatpush.bf16.xpose.msra.mxu1 %v563_v34 }
 0x174   : > { %1359 = vrot.lane.b32.xlu1 %v2887_v42, %s2675_s30 }
 0x175   : > { %1409 = vrot.lane.b32.xlu2 %v2917_v2, %s2675_s30 }
 0x177   : > { %v459_v37 = vpop.permute.xlu0 %458 }
 0x178   : > { %2126 = vmatmul.msk.bf16.vlgmr.msra.gmra.mxu1 %vm483_vm1, %v2907_v50  ;;  %v754_v55 = vunpack.c.l.b16 %v459_v37 }
 0x17f   : > { %v473_v42 = vpop.permute.xlu0 %472 }
 0x180   : > { %v830_v46 = vunpack.c.l.b16 %v473_v42  ;;  %v3070_v42 = vld [vmem:[#allocation11 + $0x10] sm:$0xff] }
 0x19d   : > { %v608_v35 = vpop.permute.xlu2 %607 }
 0x19e   : > { %v613_v36 = vsel %vm483_vm1, %v608_v35, 0 }
 0x19f   : > { %622 = vmatpush.bf16.xpose.msra.mxu3 %v613_v36 }
 0x1a5   : > { %v469_v40 = vpop.permute.xlu2 %468 }
 0x1a6   : > { %v805_v43 = vunpack.c.l.b16 %v469_v40  ;;  %2128 = vmatmul.msk.bf16.vlgmr.msra.gmra.mxu3 %vm483_vm1, %v2915_v1 }
 0x1a8   : > { %v2977_v44 = vpack.c.b16 %v805_v43, %v804_v41 }
 0x1aa   : > { %807 = vrot.lane.b32.xlu0 %v2977_v44, %s2673_s19 }
 0x1ad   : > { %v471_v45 = vpop.permute.xlu2 %470 }
 0x1ae   : > { %v829_v47 = vunpack.c.l.b16 %v471_v45 }
 0x1b0   : > { %v2981_v48 = vpack.c.b16 %v830_v46, %v829_v47 }
 0x1b2   : > { %1334 = vrot.lane.b32.xlu0 %v2879_v38, %s2675_s30  ;;  %832 = vrot.lane.b32.xlu2 %v2981_v48, %s2673_s19 }
 0x1b5   : > { %v633_v49 = vpop.permute.xlu2 %632 }
 0x1b6   : > { %v583_v51 = vpop.permute.xlu1 %582  ;;  %v638_v52 = vsel %vm483_vm1, %v633_v49, 0 }
 0x1b7   : > { %v588_v53 = vsel %vm483_vm1, %v583_v51, 0  ;;  %647 = vmatpush.bf16.xpose.msrb.mxu1 %v638_v52 }
 0x1b8   : > { %597 = vmatpush.bf16.xpose.msra.mxu2 %v588_v53 }
 0x1ba   : > { %1434 = vrot.lane.b32.xlu2 %v2915_v1, %s2675_s30 }
 0x1bd   : > { %v477_v59 = vpop.permute.xlu2 %476 }
 0x1be   : > { %v461_v54 = vpop.permute.xlu1 %460  ;;  %2129 = vmatmul.msk.bf16.vlgmr.msrb.gmra.mxu1 %vm483_vm1, %v2939_v16  ;;  %v855_v61 = vunpack.c.l.b16 %v477_v59 }
 0x1bf   : > { %v755_v38 = vunpack.c.l.b16 %v461_v54  ;;  %2127 = vmatmul.msk.bf16.vlgmr.msra.gmra.mxu2 %vm483_vm1, %v2917_v2 }
 0x1c1   : > { %v2995_v56 = vpack.c.b16 %v755_v38, %v754_v55 }
 0x1c2   : > { %1384 = vrot.lane.b32.xlu2 %v2907_v50, %s2675_s30 }
 0x1c3   : > { %757 = vrot.lane.b32.xlu1 %v2995_v56, %s2673_s19 }
 0x1c6   : > { %v683_v57 = vpop.permute.xlu1 %682 }
 0x1c7   : > { %v688_v58 = vsel %vm483_vm1, %v683_v57, 0  ;;  %v733_v63 = vpop.permute.xlu2 %732 }
 0x1c8   : > { %697 = vmatpush.bf16.xpose.msrb.mxu3 %v688_v58  ;;  %v738_v4 = vsel %vm483_vm1, %v733_v63, 0 }
 0x1ca   : > { %1609 = vrot.lane.b32.xlu2 %v2947_v23, %s2675_s30  ;;  %v549_v11 = vpop.f32.mrf.mxu3 }
 0x1cb   : > { %1509 = vrot.lane.b32.xlu1 %v2930_v10, %s2675_s30  ;;  %v3057_v34 = vadd.f32 %v879_v15, %v549_v11 }
 0x1cd   : > { %v932_v35 = vsel %vm919_vm2, %v3057_v34, -inf }
 0x1ce   : > { %v475_v60 = vpop.permute.xlu1 %474 }
 0x1cf   : > { %v854_v62 = vunpack.c.l.b16 %v475_v60  ;;  %2131 = vmatmul.msk.bf16.vlgmr.msrb.gmra.mxu3 %vm483_vm1, %v2930_v10  ;;  %v1410_v8 = vpop.permute.xlu2 %1409 }
 0x1d1   : > { %v3008_v50 = vpack.c.b16 %v855_v61, %v854_v62 }
 0x1d2   : > { %1484 = vrot.lane.b32.xlu2 %v2949_v24, %s2675_s30  ;;  %v551_v21 = vpop.f32.mrf.mxu3 }
 0x1d3   : > { %857 = vrot.lane.b32.xlu0 %v3008_v50, %s2673_s19  ;;  %1534 = vrot.lane.b32.xlu1 %v2957_v31, %s2675_s30  ;;  %s2601_s19 = sshra.s32 %s1982_s12, 4  ;;  %s2602_s19 = int_to_ptr.hbm [resolvable:$true] %s2601_s19 }
 0x1d4   : > { %s2603_s25 = scalar_lea.hbm %s2602_s19, 64  ;;  %p2608_p11 = scmp.lt.s32.totalorder %s2602_s19, %s3558_s6 }
 0x1d5   : > { %p2604_p1 = scmp.ne.s32.totalorder %s2602_s19, %s2603_s25 }
 0x1d6   : > { %v783_v0 = vpop.permute.xlu1 %782  ;;  %v658_v1 = vpop.permute.xlu0 %657 }
 0x1d7   : > { %v663_v2 = vsel %vm483_vm1, %v658_v1, 0  ;;  %v788_v3 = vsel %vm483_vm1, %v783_v0, 0  ;;  %v3095_v1 = vld [vmem:[#allocation11 + $0x30] sm:$0xff]  ;;  %p2605_p4 = pnand %p2604_p1, %p2805_p5 }
 0x1d8   : > { %672 = vmatpush.bf16.xpose.msrb.mxu2 %v663_v2  ;;  %797 = vmatpush.bf16.xpose.msrb.mxu0 %v788_v3 }
 0x1d9   : > { %p2606_p8 = pneg %p2605_p4 }
 0x1da   : > { %v524_v10 = vpop.f32.mrf.mxu2 }
 0x1db   : > { %1459 = vrot.lane.b32.xlu0 %v2939_v16, %s2675_s30  ;;  %v3048_v27 = vadd.f32 %v879_v15, %v524_v10 }
 0x1dd   : > { %v499_v9 = vpop.f32.mrf.mxu1  ;;  %v926_v29 = vsel %vm919_vm2, %v3048_v27, -inf }
 0x1de   : > { %v1310_v5 = vpop.permute.xlu1 %1309  ;;  %v708_v6 = vpop.permute.xlu0 %707  ;;  %v3034_v16 = vadd.f32 %v879_v15, %v499_v9  ;;  %v3106_v9 = vld [vmem:[#allocation11 + $0x38] sm:$0xff] }
 0x1df   : > { %v713_v7 = vsel %vm483_vm1, %v708_v6, 0  ;;  %2130 = vmatmul.msk.bf16.vlgmr.msrb.gmra.mxu2 %vm483_vm1, %v2949_v24  ;;  %2135 = vmatmul.msk.bf16.vlgmr.msrb.gmra.mxu0 %vm483_vm1, %v2947_v23  ;;  %v3042_v23 = vadd.f32 %v880_v13, %v551_v21 }
 0x1e0   : > { %747 = vmatpush.bf16.xpose.msra.mxu2 %v738_v4  ;;  %1322 = vmatpush.bf16.msra.mxu0 %v1310_v5  ;;  %v920_v20 = vsel %vm919_vm2, %v3034_v16, -inf }
 0x1e1   : > { %722 = vmatpush.bf16.xpose.msra.mxu1 %v713_v7  ;;  %v935_v25 = vsel %vm919_vm2, %v3042_v23, -inf  ;;  %v3104_v7 = vld [vmem:[#allocation11 + $0x18] sm:$0xff] }
 0x1e2   : > { %v526_v18 = vpop.f32.mrf.mxu2 }
 0x1e3   : > { %1559 = vrot.lane.b32.xlu0 %v2959_v32, %s2675_s30  ;;  %v3040_v22 = vadd.f32 %v880_v13, %v526_v18 }
 0x1e4   : > { %1422 = vmatpush.bf16.msrb.mxu0 %v1410_v8 }
 0x1e5   : > { %v501_v12 = vpop.f32.mrf.mxu1  ;;  %v929_v24 = vsel %vm919_vm2, %v3040_v22, -inf }
 0x1e6   : > { %v3032_v14 = vadd.f32 %v880_v13, %v501_v12  ;;  %v1360_v33 = vpop.permute.xlu1 %1359 }
 0x1e8   : > { %2132 = vmatmul.msk.bf16.vlgmr.msra.gmra.mxu1 %vm483_vm1, %v2957_v31  ;;  %v923_v17 = vsel %vm919_vm2, %v3032_v14, -inf }
 0x1ef   : > { %2133 = vmatmul.msk.bf16.vlgmr.msra.gmra.mxu2 %vm483_vm1, %v2959_v32 }
 0x1f5   : > { %v574_v19 = vpop.f32.mrf.mxu1 }
 0x1f6   : > { %v3063_v36 = vadd.f32 %v879_v15, %v574_v19 }
 0x1f8   : > { %v938_v37 = vsel %vm919_vm2, %v3063_v36, -inf }
 0x1fb   : > { %924 = vmax.xlane.f32.xlu2 %v923_v17 }
 0x1fd   : > { %921 = vmax.xlane.f32.xlu1 %v920_v20  ;;  %v576_v26 = vpop.f32.mrf.mxu1  ;;  %v3120_v20 = vld [vmem:[#allocation11 + $0x20] sm:$0xff] }
 0x1fe   : > { %v3050_v28 = vadd.f32 %v880_v13, %v576_v26 }
 0x200   : > { %v941_v30 = vsel %vm919_vm2, %v3050_v28, -inf }
 0x203   : > { %930 = vmax.xlane.f32.xlu2 %v929_v24 }
 0x205   : > { %936 = vmax.xlane.f32.xlu1 %v935_v25 }
 0x20c   : > { %v833_v31 = vpop.permute.xlu2 %832 }
 0x20d   : > { %927 = vmax.xlane.f32.xlu0 %v926_v29  ;;  %942 = vmax.xlane.f32.xlu1 %v941_v30  ;;  %v838_v32 = vsel %vm483_vm1, %v833_v31, 0 }
 0x20e   : > { %847 = vmatpush.bf16.xpose.msrb.mxu2 %v838_v32 }
 0x214   : > { %v1435_v43 = vpop.permute.xlu2 %1434 }
 0x215   : > { %933 = vmax.xlane.f32.xlu0 %v932_v35  ;;  %2137 = vmatmul.msk.bf16.vlgmr.msrb.gmra.mxu2 %vm483_vm1, %v2981_v48 }
 0x216   : > { %1372 = vmatpush.bf16.msra.mxu2 %v1360_v33 }
 0x21c   : > { %v808_v39 = vpop.permute.xlu0 %807  ;;  %v1385_v52 = vpop.permute.xlu2 %1384 }
 0x21d   : > { %939 = vmax.xlane.f32.xlu0 %v938_v37  ;;  %v813_v40 = vsel %vm483_vm1, %v808_v39, 0 }
 0x21e   : > { %822 = vmatpush.bf16.xpose.msrb.mxu1 %v813_v40 }
 0x224   : > { %v1335_v41 = vpop.permute.xlu0 %1334  ;;  %v3088_v58 = vpop.permute.xlu2 %1609 }
 0x225   : > { %2136 = vmatmul.msk.bf16.vlgmr.msrb.gmra.mxu1 %vm483_vm1, %v2977_v44 }
 0x226   : > { %1347 = vmatpush.bf16.msra.mxu1 %v1335_v41 }
 0x229   : > { %v624_v45 = vpop.f32.mrf.mxu3 }
 0x22a   : > { %1447 = vmatpush.bf16.msrb.mxu1 %v1435_v43  ;;  %v3073_v46 = vadd.f32 %v3070_v42, %v624_v45 }
 0x22c   : > { %v950_v47 = vsel %vm919_vm2, %v3073_v46, -inf  ;;  %v1485_v63 = vpop.permute.xlu2 %1484 }
 0x22d   : > { %951 = vmax.xlane.f32.xlu2 %v950_v47 }
 0x231   : > { %v626_v6 = vpop.f32.mrf.mxu3 }
 0x232   : > { %v3109_v10 = vadd.f32 %v3104_v7, %v626_v6 }
 0x234   : > { %v953_v15 = vsel %vm919_vm2, %v3109_v10, -inf }
 0x235   : > { %v758_v49 = vpop.permute.xlu1 %757 }
 0x236   : > { %v763_v51 = vsel %vm483_vm1, %v758_v49, 0 }
 0x237   : > { %772 = vmatpush.bf16.xpose.msra.mxu3 %v763_v51 }
 0x23b   : > { %v649_v53 = vpop.f32.mrf.mxu1 }
 0x23c   : > { %v3079_v54 = vadd.f32 %v3070_v42, %v649_v53 }
 0x23d   : > { %v3100_v4 = vpop.permute.xlu1 %1509 }
 0x23e   : > { %2134 = vmatmul.msk.bf16.vlgmr.msra.gmra.mxu3 %vm483_vm1, %v2995_v56  ;;  %v956_v55 = vsel %vm919_vm2, %v3079_v54, -inf }
 0x23f   : > { %957 = vmax.xlane.f32.xlu2 %v956_v55 }
 0x242   : > { %v599_v38 = vpop.f32.mrf.mxu2 }
 0x243   : > { %v3086_v57 = vadd.f32 %v3070_v42, %v599_v38  ;;  %v651_v13 = vpop.f32.mrf.mxu1 }
 0x244   : > { %v3123_v21 = vadd.f32 %v3104_v7, %v651_v13 }
 0x245   : > { %v858_v59 = vpop.permute.xlu0 %857  ;;  %v944_v60 = vsel %vm919_vm2, %v3086_v57, -inf  ;;  %v3118_v18 = vpop.permute.xlu1 %1534 }
 0x246   : > { %v863_v61 = vsel %vm483_vm1, %v858_v59, 0  ;;  %945 = vmax.xlane.f32.xlu1 %v944_v60  ;;  %v959_v30 = vsel %vm919_vm2, %v3123_v21, -inf  ;;  %v3162_v60 = vld [vmem:[#allocation11 + $0x28] sm:$0xff] }
 0x247   : > { %872 = vmatpush.bf16.xpose.msrb.mxu3 %v863_v61 }
 0x24a   : > { %v601_v0 = vpop.f32.mrf.mxu2 }
 0x24b   : > { %v3159_v53 = vadd.f32 %v3104_v7, %v601_v0 }
 0x24d   : > { %v1460_v62 = vpop.permute.xlu0 %1459 }
 0x24e   : > { %2138 = vmatmul.msk.bf16.vlgmr.msrb.gmra.mxu3 %vm483_vm1, %v3008_v50  ;;  %1472 = vmatpush.bf16.msrb.mxu2 %v1460_v62  ;;  %v947_v62 = vsel %vm919_vm2, %v3159_v53, -inf }
 0x24f   : > { %1397 = vmatpush.bf16.msra.mxu3 %v1385_v52 }
 0x252   : > { %v699_v19 = vpop.f32.mrf.mxu3 }
 0x253   : > { %1497 = vmatpush.bf16.msrb.mxu3 %v1485_v63  ;;  %v3126_v24 = vadd.f32 %v3120_v20, %v699_v19 }
 0x255   : > { %v968_v31 = vsel %vm919_vm2, %v3126_v24, -inf  ;;  %v3143_v43 = vpop.permute.xlu0 %1559 }
 0x25a   : > { %v701_v13 = vpop.f32.mrf.mxu3 }
 0x25c   : > { %v799_v2 = vpop.f32.mrf.mxu0 }
 0x25d   : > { %v3098_v3 = vadd.f32 %v3095_v1, %v799_v2 }
 0x25f   : > { %v992_v5 = vsel %vm919_vm2, %v3098_v3, -inf }
 0x260   : > { %993 = vmax.xlane.f32.xlu0 %v992_v5 }
 0x262   : > { %v674_v8 = vpop.f32.mrf.mxu2 }
 0x263   : > { %v3152_v49 = vadd.f32 %v3070_v42, %v674_v8 }
 0x264   : > { %v801_v11 = vpop.f32.mrf.mxu0 }
 0x265   : > { %v3112_v12 = vadd.f32 %v3106_v9, %v801_v11  ;;  %v724_v32 = vpop.f32.mrf.mxu1  ;;  %v962_v52 = vsel %vm919_vm2, %v3152_v49, -inf }
 0x266   : > { %v3137_v39 = vadd.f32 %v3120_v20, %v724_v32 }
 0x267   : > { %v995_v17 = vsel %vm919_vm2, %v3112_v12, -inf }
 0x268   : > { %954 = vmax.xlane.f32.xlu0 %v953_v15  ;;  %996 = vmax.xlane.f32.xlu1 %v995_v17  ;;  %v974_v41 = vsel %vm919_vm2, %v3137_v39, -inf }
 0x26a   : > { %v3128_v25 = vpop.f32.mrf.mxu2 }
 0x26e   : > { %v925_v26 = vpop.xlane.xlu2 %924 }
 0x26f   : > { %v1017_v29 = vsub.f32 %v3032_v14, %v925_v26  ;;  %v3178_v26 = vadd.f32 %v3162_v60, %v701_v13 }
 0x270   : > { %960 = vmax.xlane.f32.xlu0 %v959_v30  ;;  %969 = vmax.xlane.f32.xlu1 %v968_v31  ;;  %v922_v33 = vpop.xlane.xlu1 %921  ;;  %v726_v31 = vpop.f32.mrf.mxu1 }
 0x271   : > { %v1050_v35 = vmul.f32 1.442695, %v1017_v29  ;;  %v1016_v37 = vsub.f32 %v3034_v16, %v922_v33  ;;  %v971_v30 = vsel %vm919_vm2, %v3178_v26, -inf }
 0x272   : > { %v3139_v14 = vpop.f32.mrf.mxu2 }
 0x273   : > { %2309 = vpow2.f32 %v1050_v35  ;;  %v1048_v40 = vmul.f32 1.442695, %v1016_v37 }
 0x275   : > { %2311 = vpow2.f32 %v1048_v40  ;;  %v3190_v40 = vadd.f32 %v3162_v60, %v726_v31 }
 0x276   : > { %v931_v0 = vpop.xlane.xlu2 %930 }
 0x278   : > { %975 = vmax.xlane.f32.xlu1 %v974_v41  ;;  %v937_v15 = vpop.xlane.xlu1 %936 }
 0x279   : > { %v3145_v45 = vpop.eup %2309 }
 0x27a   : > { %v1115_v47 = vsel %vm919_vm2, %v3145_v45, 0.0  ;;  %v751_v55 = vpop.f32.mrf.mxu2 }
 0x27b   : > { %v3149_v16 = vpop.eup %2311  ;;  %1116 = vadd.xlane.f32.xlu0 %v1115_v47  ;;  %v3165_v42 = vadd.f32 %v3162_v60, %v751_v55  ;;  %v977_v55 = vsel %vm919_vm2, %v3190_v40, -inf }
 0x27c   : > { %v1112_v51 = vsel %vm919_vm2, %v3149_v16, 0.0 }
 0x27d   : > { %1113 = vadd.xlane.f32.xlu2 %v1112_v51  ;;  %v983_v63 = vsel %vm919_vm2, %v3165_v42, -inf  ;;  %v1021_v51 = vsub.f32 %v3042_v23, %v937_v15 }
 0x280   : > { %963 = vmax.xlane.f32.xlu1 %v962_v52  ;;  %v928_v38 = vpop.xlane.xlu0 %927  ;;  %v943_v33 = vpop.xlane.xlu1 %942 }
 0x281   : > { %v1018_v59 = vsub.f32 %v3048_v27, %v928_v38  ;;  %v1019_v27 = vsub.f32 %v3040_v22, %v931_v0 }
 0x283   : > { %v1052_v61 = vmul.f32 1.442695, %v1018_v59  ;;  %v1054_v17 = vmul.f32 1.442695, %v1019_v27  ;;  %v1058_v59 = vmul.f32 1.442695, %v1021_v51 }
 0x285   : > { %948 = vmax.xlane.f32.xlu2 %v947_v62  ;;  %2313 = vpow2.f32 %v1052_v61 }
 0x288   : > { %984 = vmax.xlane.f32.xlu1 %v983_v63  ;;  %v934_v2 = vpop.xlane.xlu0 %933 }
 0x289   : > { %v1020_v5 = vsub.f32 %v3057_v34, %v934_v2 }
 0x28b   : > { %v1056_v6 = vmul.f32 1.442695, %v1020_v5  ;;  %v3173_v8 = vpop.eup %2313 }
 0x28c   : > { %v1118_v11 = vsel %vm919_vm2, %v3173_v8, 0.0 }
 0x28d   : > { %2315 = vpow2.f32 %v1056_v6  ;;  %1119 = vadd.xlane.f32.xlu2 %v1118_v11 }
 0x28e   : > { %2317 = vpow2.f32 %v1054_v17 }
 0x290   : > { %v940_v19 = vpop.xlane.xlu0 %939 }
 0x291   : > { %v1022_v22 = vsub.f32 %v3063_v36, %v940_v19  ;;  %v1023_v36 = vsub.f32 %v3050_v28, %v943_v33  ;;  %v3207_v28 = vadd.f32 %v3104_v7, %v3128_v25  ;;  %v3223_v25 = vadd.f32 %v3120_v20, %v3139_v14 }
 0x293   : > { %v3180_v29 = vpop.eup %2315  ;;  %v1060_v32 = vmul.f32 1.442695, %v1022_v22  ;;  %v1062_v38 = vmul.f32 1.442695, %v1023_v36  ;;  %v965_v62 = vsel %vm919_vm2, %v3207_v28, -inf  ;;  %v980_v6 = vsel %vm919_vm2, %v3223_v25, -inf }
 0x294   : > { %v1124_v34 = vsel %vm919_vm2, %v3180_v29, 0.0  ;;  %v3187_v37 = vpop.eup %2317 }
 0x295   : > { %1125 = vadd.xlane.f32.xlu0 %v1124_v34  ;;  %972 = vmax.xlane.f32.xlu2 %v971_v30  ;;  %2319 = vpow2.f32 %v1060_v32  ;;  %v1121_v52 = vsel %vm919_vm2, %v3187_v37, 0.0 }
 0x296   : > { %2321 = vpow2.f32 %v1062_v38 }
 0x297   : > { %2323 = vpow2.f32 %v1058_v59 }
 0x298   : > { %v849_v35 = vpop.f32.mrf.mxu2 }
 0x299   : > { %v3193_v41 = vadd.f32 %v3095_v1, %v849_v35 }
 0x29b   : > { %v1004_v47 = vsel %vm919_vm2, %v3193_v41, -inf  ;;  %v3203_v61 = vpop.eup %2319 }
 0x29c   : > { %1005 = vmax.xlane.f32.xlu1 %v1004_v47  ;;  %v1130_v23 = vsel %vm919_vm2, %v3203_v61, 0.0  ;;  %v3213_v63 = vpop.eup %2321 }
 0x29d   : > { %1122 = vadd.xlane.f32.xlu0 %v1121_v52  ;;  %978 = vmax.xlane.f32.xlu2 %v977_v55  ;;  %v3215_v0 = vpop.eup %2323  ;;  %v1133_v5 = vsel %vm919_vm2, %v3213_v63, 0.0 }
 0x29e   : > { %v1127_v7 = vsel %vm919_vm2, %v3215_v0, 0.0 }
 0x2a0   : > { %v952_v14 = vpop.xlane.xlu2 %951  ;;  %v851_v32 = vpop.f32.mrf.mxu2 }
 0x2a1   : > { %v3244_v35 = vadd.f32 %v3106_v9, %v851_v32 }
 0x2a2   : > { %v824_v2 = vpop.f32.mrf.mxu1 }
 0x2a3   : > { %v3226_v27 = vadd.f32 %v3095_v1, %v824_v2 }
 0x2a5   : > { %1131 = vadd.xlane.f32.xlu0 %v1130_v23  ;;  %966 = vmax.xlane.f32.xlu2 %v965_v62  ;;  %v998_v13 = vsel %vm919_vm2, %v3226_v27, -inf }
 0x2aa   : > { %v826_v11 = vpop.f32.mrf.mxu1 }
 0x2ab   : > { %v3233_v15 = vadd.f32 %v3106_v9, %v826_v11 }
 0x2ad   : > { %1134 = vadd.xlane.f32.xlu0 %v1133_v5  ;;  %1128 = vadd.xlane.f32.xlu2 %v1127_v7  ;;  %v1001_v17 = vsel %vm919_vm2, %v3233_v15, -inf  ;;  %v1026_v5 = vsub.f32 %v3073_v46, %v952_v14 }
 0x2af   : > { %v1068_v11 = vmul.f32 1.442695, %v1026_v5 }
 0x2b2   : > { %v958_v36 = vpop.xlane.xlu2 %957 }
 0x2b3   : > { %v1028_v52 = vsub.f32 %v3079_v54, %v958_v36 }
 0x2b5   : > { %981 = vmax.xlane.f32.xlu0 %v980_v6  ;;  %999 = vmax.xlane.f32.xlu2 %v998_v13  ;;  %v1072_v55 = vmul.f32 1.442695, %v1028_v52 }
 0x2b9   : > { %v946_v19 = vpop.xlane.xlu1 %945 }
 0x2ba   : > { %v1024_v30 = vsub.f32 %v3086_v57, %v946_v19  ;;  %v1007_v57 = vsel %vm919_vm2, %v3244_v35, -inf }
 0x2bc   : > { %v1064_v33 = vmul.f32 1.442695, %v1024_v30 }
 0x2bd   : > { %1002 = vmax.xlane.f32.xlu0 %v1001_v17 }
 0x2be   : > { %2325 = vpow2.f32 %v1064_v33 }
 0x2bf   : > { %2327 = vpow2.f32 %v1072_v55 }
 0x2c1   : > { %v774_v22 = vpop.f32.mrf.mxu3 }
 0x2c2   : > { %v3238_v34 = vadd.f32 %v3120_v20, %v774_v22 }
 0x2c4   : > { %v986_v31 = vsel %vm919_vm2, %v3238_v34, -inf  ;;  %v3254_v38 = vpop.eup %2325 }
 0x2c5   : > { %987 = vmax.xlane.f32.xlu2 %v986_v31  ;;  %v1136_v2 = vsel %vm919_vm2, %v3254_v38, 0.0  ;;  %v3265_v6 = vpop.eup %2327 }
 0x2c6   : > { %v1148_v30 = vsel %vm919_vm2, %v3265_v6, 0.0 }
 0x2c9   : > { %v776_v47 = vpop.f32.mrf.mxu3 }
 0x2ca   : > { %v3247_v51 = vadd.f32 %v3162_v60, %v776_v47 }
 0x2cc   : > { %v989_v20 = vsel %vm919_vm2, %v3247_v51, -inf }
 0x2cd   : > { %1008 = vmax.xlane.f32.xlu2 %v1007_v57  ;;  %990 = vmax.xlane.f32.xlu0 %v989_v20 }
 0x2d1   : > { %v874_v59 = vpop.f32.mrf.mxu3 }
 0x2d2   : > { %v3257_v23 = vadd.f32 %v3095_v1, %v874_v59 }
 0x2d3   : > { %v994_v60 = vpop.xlane.xlu0 %993 }
 0x2d4   : > { %v1040_v54 = vsub.f32 %v3098_v3, %v994_v60  ;;  %v1010_v62 = vsel %vm919_vm2, %v3257_v23, -inf }
 0x2d5   : > { %1011 = vmax.xlane.f32.xlu1 %v1010_v62  ;;  %1137 = vadd.xlane.f32.xlu2 %v1136_v2 }
 0x2d6   : > { %v1096_v7 = vmul.f32 1.442695, %v1040_v54 }
 0x2d8   : > { %2329 = vpow2.f32 %v1096_v7 }
 0x2d9   : > { %v876_v1 = vpop.f32.mrf.mxu3  ;;  %2331 = vpow2.f32 %v1068_v11 }
 0x2da   : > { %v3268_v13 = vadd.f32 %v3106_v9, %v876_v1 }
 0x2db   : > { %v997_v3 = vpop.xlane.xlu1 %996  ;;  %v955_v17 = vpop.xlane.xlu0 %954 }
 0x2dc   : > { %v1027_v19 = vsub.f32 %v3109_v10, %v955_v17  ;;  %v1013_v22 = vsel %vm919_vm2, %v3268_v13, -inf  ;;  %v1041_v14 = vsub.f32 %v3112_v12, %v997_v3 }
 0x2dd   : > { %1014 = vmax.xlane.f32.xlu1 %v1013_v22  ;;  %1149 = vadd.xlane.f32.xlu2 %v1148_v30 }
 0x2de   : > { %v3275_v46 = vpop.eup %2329  ;;  %v1070_v31 = vmul.f32 1.442695, %v1027_v19  ;;  %v1098_v10 = vmul.f32 1.442695, %v1041_v14 }
 0x2df   : > { %v1184_v9 = vsel %vm919_vm2, %v3275_v46, 0.0  ;;  %v3280_v33 = vpop.eup %2331 }
 0x2e0   : > { %1185 = vadd.xlane.f32.xlu0 %v1184_v9  ;;  %2333 = vpow2.f32 %v1070_v31  ;;  %v1142_v12 = vsel %vm919_vm2, %v3280_v33, 0.0 }
 0x2e1   : > { %2335 = vpow2.f32 %v1098_v10 }
 0x2e3   : > { %v970_v32 = vpop.xlane.xlu1 %969  ;;  %v961_v52 = vpop.xlane.xlu0 %960 }
 0x2e4   : > { %v1032_v36 = vsub.f32 %v3126_v24, %v970_v32  ;;  %v1029_v10 = vsub.f32 %v3123_v21, %v961_v52 }
 0x2e6   : > { %v1080_v47 = vmul.f32 1.442695, %v1032_v36  ;;  %v3283_v57 = vpop.eup %2333 }
 0x2e7   : > { %v1145_v20 = vsel %vm919_vm2, %v3283_v57, 0.0  ;;  %v3289_v59 = vpop.eup %2335 }
 0x2e8   : > { %2337 = vpow2.f32 %v1080_v47  ;;  %1143 = vadd.xlane.f32.xlu0 %v1142_v12  ;;  %1146 = vadd.xlane.f32.xlu1 %v1145_v20  ;;  %v1187_v62 = vsel %vm919_vm2, %v3289_v59, 0.0 }
 0x2eb   : > { %v976_v55 = vpop.xlane.xlu1 %975 }
 0x2ee   : > { %v3291_v60 = vpop.eup %2337  ;;  %v1117_v24 = vpop.xlane.xlu0 %1116 }
 0x2ef   : > { %2339 = vrcp.f32 %v1117_v24  ;;  %v1160_v54 = vsel %vm919_vm2, %v3291_v60, 0.0 }
 0x2f0   : > { %v1114_v2 = vpop.xlane.xlu2 %1113  ;;  %1161 = vadd.xlane.f32.xlu2 %v1160_v54  ;;  %1188 = vadd.xlane.f32.xlu0 %v1187_v62 }
 0x2f1   : > { %2341 = vrcp.f32 %v1114_v2 }
 0x2f3   : > { %v964_v5 = vpop.xlane.xlu1 %963 }
 0x2f4   : > { %v1030_v7 = vsub.f32 %v3152_v49, %v964_v5 }
 0x2f5   : > { %v2340_v1 = vpop.eup %2339 }
 0x2f6   : > { %v1241_v11 = vmul.f32 %v2340_v1, %v3145_v45  ;;  %v1076_v3 = vmul.f32 1.442695, %v1030_v7  ;;  %v1074_v45 = vmul.f32 1.442695, %v1029_v10 }
 0x2f7   : > { %v2342_v17 = vpop.eup %2341 }
 0x2f8   : > { %v1273_v19 = vpack.c.bf16 %v1241_v11, %v1241_v11  ;;  %v1240_v22 = vmul.f32 %v2342_v17, %v3149_v16  ;;  %2343 = vpow2.f32 %v1076_v3  ;;  %v949_v30 = vpop.xlane.xlu2 %948 }
 0x2f9   : > { %v1025_v14 = vsub.f32 %v3159_v53, %v949_v30  ;;  %v1034_v53 = vsub.f32 %v3137_v39, %v976_v55 }
 0x2fa   : > { %v1307_v31 = vunpack.c.l.b16 %v1273_v19  ;;  %v1272_v9 = vpack.c.bf16 %v1240_v22, %v1240_v22 }
 0x2fb   : > { %v1066_v32 = vmul.f32 1.442695, %v1025_v14  ;;  %v1084_v52 = vmul.f32 1.442695, %v1034_v53 }
 0x2fc   : > { %v1306_v36 = vunpack.c.l.b16 %v1272_v9 }
 0x2fd   : > { %2345 = vpow2.f32 %v1066_v32 }
 0x2fe   : > { %v3302_v49 = vpop.eup %2343  ;;  %v1308_v47 = vpack.c.b16 %v1307_v31, %v1306_v36  ;;  %2347 = vpow2.f32 %v1074_v45 }
 0x2ff   : > { %v1154_v12 = vsel %vm919_vm2, %v3302_v49, 0.0  ;;  %2349 = vpow2.f32 %v1084_v52 }
 0x300   : > { %1155 = vadd.xlane.f32.xlu2 %v1154_v12  ;;  %2139 = vmatmul.msk.bf16.vlgmr.msra.gmra.mxu0 %vm919_vm2, %v1308_v47  ;;  %v1120_v16 = vpop.xlane.xlu2 %1119 }
 0x301   : > { %1522 = vmatpush.bf16.msra.mxu0 %v3100_v4  ;;  %2351 = vrcp.f32 %v1120_v16 }
 0x303   : > { %v3309_v20 = vpop.eup %2345 }
 0x304   : > { %v1139_v21 = vsel %vm919_vm2, %v3309_v20, 0.0  ;;  %v3313_v54 = vpop.eup %2347 }
 0x305   : > { %1140 = vadd.xlane.f32.xlu0 %v1139_v21  ;;  %v1151_v4 = vsel %vm919_vm2, %v3313_v54, 0.0  ;;  %v3318_v39 = vpop.eup %2349 }
 0x306   : > { %v1166_v19 = vsel %vm919_vm2, %v3318_v39, 0.0 }
 0x307   : > { %v2352_v7 = vpop.eup %2351 }
 0x308   : > { %v1126_v24 = vpop.xlane.xlu0 %1125  ;;  %v973_v62 = vpop.xlane.xlu2 %972  ;;  %v1242_v17 = vmul.f32 %v2352_v7, %v3173_v8 }
 0x309   : > { %v1033_v2 = vsub.f32 %v3178_v26, %v973_v62 }
 0x30a   : > { %v1274_v14 = vpack.c.bf16 %v1242_v17, %v1242_v17 }
 0x30b   : > { %v1082_v5 = vmul.f32 1.442695, %v1033_v2 }
 0x30c   : > { %v1331_v36 = vunpack.c.l.b16 %v1274_v14 }
 0x30d   : > { %1152 = vadd.xlane.f32.xlu0 %v1151_v4  ;;  %2353 = vpow2.f32 %v1082_v5 }
 0x310   : > { %v1123_v55 = vpop.xlane.xlu0 %1122  ;;  %v979_v1 = vpop.xlane.xlu2 %978 }
 0x311   : > { %2355 = vrcp.f32 %v1123_v55  ;;  %v1035_v11 = vsub.f32 %v3190_v40, %v979_v1  ;;  %v985_v55 = vpop.xlane.xlu1 %984 }
 0x313   : > { %v3321_v3 = vpop.eup %2353  ;;  %v1086_v26 = vmul.f32 1.442695, %v1035_v11 }
 0x314   : > { %v1163_v22 = vsel %vm919_vm2, %v3321_v3, 0.0 }
 0x315   : > { %1167 = vadd.xlane.f32.xlu0 %v1166_v19  ;;  %2357 = vpow2.f32 %v1086_v26  ;;  %1164 = vadd.xlane.f32.xlu1 %v1163_v22  ;;  %v1037_v22 = vsub.f32 %v3165_v42, %v985_v55 }
 0x317   : > { %v2356_v30 = vpop.eup %2355 }
 0x318   : > { %v1243_v31 = vmul.f32 %v2356_v30, %v3187_v37  ;;  %v1132_v9 = vpop.xlane.xlu0 %1131  ;;  %v967_v40 = vpop.xlane.xlu2 %966 }
 0x319   : > { %v1031_v32 = vsub.f32 %v3207_v28, %v967_v40  ;;  %2359 = vrcp.f32 %v1132_v9 }
 0x31a   : > { %v1275_v10 = vpack.c.bf16 %v1243_v31, %v1243_v31  ;;  %2361 = vrcp.f32 %v1126_v24 }
 0x31b   : > { %v3330_v8 = vpop.eup %2357  ;;  %v1078_v45 = vmul.f32 1.442695, %v1031_v32 }
 0x31c   : > { %v1332_v47 = vunpack.c.l.b16 %v1275_v10  ;;  %v1169_v12 = vsel %vm919_vm2, %v3330_v8, 0.0 }
 0x31d   : > { %2363 = vpow2.f32 %v1078_v45  ;;  %1170 = vadd.xlane.f32.xlu1 %v1169_v12 }
 0x31e   : > { %v1333_v16 = vpack.c.b16 %v1332_v47, %v1331_v36  ;;  %v1090_v36 = vmul.f32 1.442695, %v1037_v22 }
 0x31f   : > { %v2360_v53 = vpop.eup %2359 }
 0x320   : > { %2140 = vmatmul.msk.bf16.vlgmr.msra.gmra.mxu1 %vm919_vm2, %v1333_v16  ;;  %v1135_v37 = vpop.xlane.xlu0 %1134  ;;  %v1129_v21 = vpop.xlane.xlu2 %1128  ;;  %v1246_v24 = vmul.f32 %v2360_v53, %v3203_v61 }
 0x321   : > { %1547 = vmatpush.bf16.msra.mxu1 %v3118_v18  ;;  %2365 = vrcp.f32 %v1135_v37  ;;  %v2362_v28 = vpop.eup %2361  ;;  %v1006_v37 = vpop.xlane.xlu1 %1005 }
 0x322   : > { %2367 = vrcp.f32 %v1129_v21  ;;  %v1244_v62 = vmul.f32 %v2362_v28, %v3180_v29  ;;  %v1278_v7 = vpack.c.bf16 %v1246_v24, %v1246_v24  ;;  %v1044_v28 = vsub.f32 %v3193_v41, %v1006_v37 }
 0x323   : > { %v3336_v52 = vpop.eup %2363 }
 0x324   : > { %v1157_v2 = vsel %vm919_vm2, %v3336_v52, 0.0  ;;  %v1276_v11 = vpack.c.bf16 %v1244_v62, %v1244_v62  ;;  %v1381_v31 = vunpack.c.l.b16 %v1278_v7  ;;  %v1104_v62 = vmul.f32 1.442695, %v1044_v28 }
 0x325   : > { %1158 = vadd.xlane.f32.xlu0 %v1157_v2 }
 0x326   : > { %v1356_v10 = vunpack.c.l.b16 %v1276_v11 }
 0x327   : > { %v2366_v5 = vpop.eup %2365 }
 0x328   : > { %v2368_v4 = vpop.eup %2367  ;;  %v1247_v1 = vmul.f32 %v2366_v5, %v3213_v63  ;;  %v982_v18 = vpop.xlane.xlu0 %981 }
 0x329   : > { %v1245_v17 = vmul.f32 %v2368_v4, %v3215_v0  ;;  %v1000_v26 = vpop.xlane.xlu2 %999  ;;  %v1036_v19 = vsub.f32 %v3223_v25, %v982_v18 }
 0x32a   : > { %v1279_v61 = vpack.c.bf16 %v1247_v1, %v1247_v1  ;;  %v1042_v29 = vsub.f32 %v3226_v27, %v1000_v26 }
 0x32b   : > { %v1277_v30 = vpack.c.bf16 %v1245_v17, %v1245_v17  ;;  %v1088_v14 = vmul.f32 1.442695, %v1036_v19 }
 0x32c   : > { %v1382_v9 = vunpack.c.l.b16 %v1279_v61  ;;  %v1100_v40 = vmul.f32 1.442695, %v1042_v29 }
 0x32d   : > { %v1357_v32 = vunpack.c.l.b16 %v1277_v30  ;;  %2369 = vpow2.f32 %v1088_v14 }
 0x32e   : > { %v1383_v63 = vpack.c.b16 %v1382_v9, %v1381_v31  ;;  %2371 = vpow2.f32 %v1100_v40 }
 0x32f   : > { %v1358_v0 = vpack.c.b16 %v1357_v32, %v1356_v10  ;;  %2373 = vpow2.f32 %v1090_v36 }
 0x330   : > { %2142 = vmatmul.msk.bf16.vlgmr.msra.gmra.mxu3 %vm919_vm2, %v1383_v63  ;;  %v1003_v25 = vpop.xlane.xlu0 %1002 }
 0x331   : > { %2141 = vmatmul.msk.bf16.vlgmr.msra.gmra.mxu2 %vm919_vm2, %v1358_v0  ;;  %v1043_v27 = vsub.f32 %v3233_v15, %v1003_v25 }
 0x332   : > { %1572 = vmatpush.bf16.msra.mxu2 %v3143_v43 }
 0x333   : > { %v3350_v42 = vpop.eup %2369  ;;  %v1102_v16 = vmul.f32 1.442695, %v1043_v27 }
 0x334   : > { %v3353_v47 = vpop.eup %2371  ;;  %v1172_v45 = vsel %vm919_vm2, %v3350_v42, 0.0 }
 0x335   : > { %v1190_v12 = vsel %vm919_vm2, %v3353_v47, 0.0  ;;  %1173 = vadd.xlane.f32.xlu1 %v1172_v45  ;;  %v3359_v21 = vpop.eup %2373  ;;  %2375 = vpow2.f32 %v1102_v16 }
 0x336   : > { %1191 = vadd.xlane.f32.xlu0 %v1190_v12  ;;  %v1175_v24 = vsel %vm919_vm2, %v3359_v21, 0.0 }
 0x338   : > { %v988_v53 = vpop.xlane.xlu2 %987 }
 0x339   : > { %v1038_v43 = vsub.f32 %v3238_v34, %v988_v53 }
 0x33b   : > { %v1092_v15 = vmul.f32 1.442695, %v1038_v43  ;;  %v3365_v4 = vpop.eup %2375 }
 0x33c   : > { %v1193_v18 = vsel %vm919_vm2, %v3365_v4, 0.0 }
 0x33d   : > { %2377 = vpow2.f32 %v1092_v15  ;;  %1176 = vadd.xlane.f32.xlu1 %v1175_v24 }
 0x33e   : > { %2379 = vpow2.f32 %v1104_v62 }
 0x340   : > { %v1009_v2 = vpop.xlane.xlu2 %1008  ;;  %v991_v5 = vpop.xlane.xlu0 %990 }
 0x341   : > { %v1039_v55 = vsub.f32 %v3247_v51, %v991_v5  ;;  %v1045_v34 = vsub.f32 %v3244_v35, %v1009_v2 }
 0x343   : > { %v3368_v7 = vpop.eup %2377  ;;  %v1094_v41 = vmul.f32 1.442695, %v1039_v55  ;;  %v1106_v11 = vmul.f32 1.442695, %v1045_v34 }
 0x344   : > { %v1178_v1 = vsel %vm919_vm2, %v3368_v7, 0.0  ;;  %v3375_v17 = vpop.eup %2379 }
 0x345   : > { %1179 = vadd.xlane.f32.xlu2 %v1178_v1  ;;  %1194 = vadd.xlane.f32.xlu1 %v1193_v18  ;;  %2381 = vpow2.f32 %v1094_v41  ;;  %v1196_v35 = vsel %vm919_vm2, %v3375_v17, 0.0 }
 0x346   : > { %2383 = vpow2.f32 %v1106_v11 }
 0x348   : > { %v1012_v26 = vpop.xlane.xlu1 %1011 }
 0x34b   : > { %v3377_v51 = vpop.eup %2381 }
 0x34c   : > { %v1181_v19 = vsel %vm919_vm2, %v3377_v51, 0.0  ;;  %v3383_v61 = vpop.eup %2383 }
 0x34d   : > { %1197 = vadd.xlane.f32.xlu1 %v1196_v35  ;;  %1182 = vadd.xlane.f32.xlu0 %v1181_v19  ;;  %v1199_v30 = vsel %vm919_vm2, %v3383_v61, 0.0 }
 0x350   : > { %v3387_v22 = vpop.xlane.xlu1 %1014 }
 0x353   : > { %v3385_v29 = vpop.xlane.xlu0 %1185 }
 0x355   : > { %1200 = vadd.xlane.f32.xlu1 %v1199_v30 }
 0x35b   : > { %v1144_v14 = vpop.xlane.xlu0 %1143  ;;  %v1147_v31 = vpop.xlane.xlu1 %1146 }
 0x35c   : > { %2385 = vrcp.f32 %v1144_v14 }
 0x35d   : > { %2387 = vrcp.f32 %v1147_v31  ;;  %1634 = vrot.lane.b32.xlu2 %v2977_v44, %s2675_s30  ;;  %v1138_v44 = vpop.xlane.xlu2 %1137 }
 0x35e   : > { %2389 = vrcp.f32 %v1138_v44 }
 0x361   : > { %1659 = vrot.lane.b32.xlu0 %v2981_v48, %s2675_s30 }
 0x362   : > { %v2386_v9 = vpop.eup %2385 }
 0x363   : > { %v2388_v40 = vpop.eup %2387  ;;  %v1250_v10 = vmul.f32 %v2386_v9, %v3280_v33  ;;  %v1189_v48 = vpop.xlane.xlu0 %1188  ;;  %v1046_v33 = vsub.f32 %v3257_v23, %v1012_v26 }
 0x364   : > { %v1251_v32 = vmul.f32 %v2388_v40, %v3283_v57  ;;  %v2390_v16 = vpop.eup %2389 }
 0x365   : > { %v1282_v63 = vpack.c.bf16 %v1250_v10, %v1250_v10  ;;  %v1108_v45 = vmul.f32 1.442695, %v1046_v33  ;;  %v1150_v57 = vpop.xlane.xlu2 %1149  ;;  %v1248_v37 = vmul.f32 %v2390_v16, %v3254_v38 }
 0x366   : > { %v1283_v36 = vpack.c.bf16 %v1251_v32, %v1251_v32 }
 0x367   : > { %v1431_v0 = vunpack.c.l.b16 %v1282_v63  ;;  %v1280_v28 = vpack.c.bf16 %v1248_v37, %v1248_v37 }
 0x368   : > { %v1432_v25 = vunpack.c.l.b16 %v1283_v36 }
 0x369   : > { %1684 = vrot.lane.b32.xlu0 %v3008_v50, %s2675_s30  ;;  %v1406_v5 = vunpack.c.l.b16 %v1280_v28 }
 0x36a   : > { %v1433_v27 = vpack.c.b16 %v1432_v25, %v1431_v0 }
 0x36c   : > { %2144 = vmatmul.msk.bf16.vlgmr.msrb.gmra.mxu1 %vm919_vm2, %v1433_v27 }
 0x36d   : > { %v1162_v24 = vpop.xlane.xlu2 %1161 }
 0x36e   : > { %1584 = vrot.lane.b32.xlu1 %v2995_v56, %s2675_s30 }
 0x375   : > { %v1156_v32 = vpop.xlane.xlu2 %1155 }
 0x378   : > { %v1141_v12 = vpop.xlane.xlu0 %1140 }
 0x379   : > { %2391 = vrcp.f32 %v1141_v12 }
 0x37a   : > { %2393 = vrcp.f32 %v1150_v57 }
 0x37b   : > { %2395 = vpow2.f32 %v1108_v45 }
 0x37d   : > { %v1324_v50 = vpop.f32.mrf.mxu0 }
 0x37e   : > { %v1704_v53 = vpack.c.bf16 %v1324_v50, %v1324_v50 }
 0x37f   : > { %v2392_v43 = vpop.eup %2391 }
 0x380   : > { %v1249_v56 = vmul.f32 %v2392_v43, %v3309_v20  ;;  %1737 = vst.msk [vmem:[#allocation2] sm:$0xf] %vm1736_vm3, %v1704_v53  ;;  %v1153_v15 = vpop.xlane.xlu0 %1152  ;;  %v2394_v23 = vpop.eup %2393  ;;  %v1047_v20 = vsub.f32 %v3268_v13, %v3387_v22 }
 0x381   : > { %2397 = vrcp.f32 %v1153_v15  ;;  %v3406_v62 = vpop.eup %2395  ;;  %v1252_v55 = vmul.f32 %v2394_v23, %v3265_v6 }
 0x382   : > { %v1281_v2 = vpack.c.bf16 %v1249_v56, %v1249_v56  ;;  %2399 = vrcp.f32 %v1162_v24  ;;  %v1202_v41 = vsel %vm919_vm2, %v3406_v62, 0.0  ;;  %v1110_v14 = vmul.f32 1.442695, %v1047_v20 }
 0x383   : > { %v1284_v26 = vpack.c.bf16 %v1252_v55, %v1252_v55 }
 0x384   : > { %v1407_v38 = vunpack.c.l.b16 %v1281_v2 }
 0x385   : > { %v1326_v34 = vpop.f32.mrf.mxu0  ;;  %v1456_v13 = vunpack.c.l.b16 %v1284_v26 }
 0x386   : > { %v1408_v1 = vpack.c.b16 %v1407_v38, %v1406_v5  ;;  %v1705_v18 = vpack.c.bf16 %v1326_v34, %v1326_v34  ;;  %1203 = vadd.xlane.f32.xlu2 %v1202_v41 }
 0x387   : > { %v2398_v11 = vpop.eup %2397 }
 0x388   : > { %v1253_v35 = vmul.f32 %v2398_v11, %v3313_v54  ;;  %1738 = vst.msk [vmem:[#allocation2 + $0x4] sm:$0xf] %vm1736_vm3, %v1705_v18  ;;  %2143 = vmatmul.msk.bf16.vlgmr.msrb.gmra.mxu0 %vm919_vm2, %v1408_v1  ;;  %v1165_v6 = vpop.xlane.xlu1 %1164  ;;  %v1168_v19 = vpop.xlane.xlu0 %1167 }
 0x389   : > { %1622 = vmatpush.bf16.msrb.mxu0 %v3088_v58  ;;  %v2400_v30 = vpop.eup %2399  ;;  %2401 = vrcp.f32 %v1165_v6 }
 0x38a   : > { %v1285_v31 = vpack.c.bf16 %v1253_v35, %v1253_v35  ;;  %2403 = vrcp.f32 %v1168_v19  ;;  %v1256_v9 = vmul.f32 %v2400_v30, %v3291_v60 }
 0x38b   : > { %2405 = vpow2.f32 %v1110_v14 }
 0x38c   : > { %v1457_v22 = vunpack.c.l.b16 %v1285_v31  ;;  %v1288_v10 = vpack.c.bf16 %v1256_v9, %v1256_v9  ;;  %2407 = vrcp.f32 %v1189_v48 }
 0x38e   : > { %v1458_v40 = vpack.c.b16 %v1457_v22, %v1456_v13  ;;  %v1506_v60 = vunpack.c.l.b16 %v1288_v10 }
 0x38f   : > { %v2402_v54 = vpop.eup %2401 }
 0x390   : > { %2145 = vmatmul.msk.bf16.vlgmr.msrb.gmra.mxu2 %vm919_vm2, %v1458_v40  ;;  %v1257_v58 = vmul.f32 %v2402_v54, %v3321_v3  ;;  %v1171_v63 = vpop.xlane.xlu1 %1170  ;;  %v2404_v36 = vpop.eup %2403 }
 0x391   : > { %2409 = vrcp.f32 %v1171_v63  ;;  %v3421_v25 = vpop.eup %2405  ;;  %v1258_v44 = vmul.f32 %v2404_v36, %v3318_v39 }
 0x392   : > { %2411 = vrcp.f32 %v3385_v29  ;;  %v1289_v0 = vpack.c.bf16 %v1257_v58, %v1257_v58  ;;  %v2408_v33 = vpop.eup %2407  ;;  %v1205_v48 = vsel %vm919_vm2, %v3421_v25, 0.0 }
 0x393   : > { %2413 = vrcp.f32 %v1156_v32  ;;  %v1290_v12 = vpack.c.bf16 %v1258_v44, %v1258_v44  ;;  %v1265_v50 = vmul.f32 %v2408_v33, %v3289_v59 }
 0x394   : > { %v1507_v27 = vunpack.c.l.b16 %v1289_v0 }
 0x395   : > { %v1531_v28 = vunpack.c.l.b16 %v1290_v12  ;;  %v1297_v24 = vpack.c.bf16 %v1265_v50, %v1265_v50 }
 0x396   : > { %v1508_v45 = vpack.c.b16 %v1507_v27, %v1506_v60 }
 0x397   : > { %v2410_v57 = vpop.eup %2409  ;;  %v1607_v59 = vunpack.c.l.b16 %v1297_v24 }
 0x398   : > { %1206 = vadd.xlane.f32.xlu1 %v1205_v48  ;;  %v2412_v3 = vpop.eup %2411  ;;  %v1259_v16 = vmul.f32 %v2410_v57, %v3330_v8  ;;  %2147 = vmatmul.msk.bf16.vlgmr.msra.gmra.mxu0 %vm919_vm2, %v1508_v45  ;;  %v1159_v29 = vpop.xlane.xlu0 %1158 }
 0x399   : > { %v2414_v37 = vpop.eup %2413  ;;  %2415 = vrcp.f32 %v1159_v29  ;;  %v1264_v39 = vmul.f32 %v2412_v3, %v3275_v46 }
 0x39a   : > { %v1291_v53 = vpack.c.bf16 %v1259_v16, %v1259_v16  ;;  %v1254_v43 = vmul.f32 %v2414_v37, %v3302_v49 }
 0x39b   : > { %v1296_v8 = vpack.c.bf16 %v1264_v39, %v1264_v39 }
 0x39c   : > { %v1532_v56 = vunpack.c.l.b16 %v1291_v53  ;;  %v1286_v55 = vpack.c.bf16 %v1254_v43, %v1254_v43 }
 0x39d   : > { %v1349_v15 = vpop.f32.mrf.mxu1  ;;  %v1606_v46 = vunpack.c.l.b16 %v1296_v8 }
 0x39e   : > { %v1706_v23 = vpack.c.bf16 %v1349_v15, %v1349_v15  ;;  %v1533_v2 = vpack.c.b16 %v1532_v56, %v1531_v28  ;;  %v1481_v41 = vunpack.c.l.b16 %v1286_v55 }
 0x39f   : > { %v2416_v5 = vpop.eup %2415  ;;  %v1608_v18 = vpack.c.b16 %v1607_v59, %v1606_v46 }
 0x3a0   : > { %1739 = vst.msk [vmem:[#allocation2 + $0x8] sm:$0xf] %vm1736_vm3, %v1706_v23  ;;  %v1255_v38 = vmul.f32 %v2416_v5, %v3336_v52  ;;  %2148 = vmatmul.msk.bf16.vlgmr.msra.gmra.mxu1 %vm919_vm2, %v1533_v2 }
 0x3a2   : > { %v1287_v34 = vpack.c.bf16 %v1255_v38, %v1255_v38 }
 0x3a4   : > { %v1482_v49 = vunpack.c.l.b16 %v1287_v34 }
 0x3a5   : > { %v1351_v20 = vpop.f32.mrf.mxu1 }
 0x3a6   : > { %v1707_v1 = vpack.c.bf16 %v1351_v20, %v1351_v20  ;;  %v1483_v11 = vpack.c.b16 %v1482_v49, %v1481_v41 }
 0x3a8   : > { %1740 = vst.msk [vmem:[#allocation2 + $0xc] sm:$0xf] %vm1736_vm3, %v1707_v1  ;;  %v1174_v26 = vpop.xlane.xlu1 %1173  ;;  %2146 = vmatmul.msk.bf16.vlgmr.msrb.gmra.mxu3 %vm919_vm2, %v1483_v11  ;;  %2151 = vmatmul.msk.bf16.vlgmr.msrb.gmra.mxu0 %vm919_vm2, %v1608_v18 }
 0x3a9   : > { %2417 = vrcp.f32 %v1174_v26  ;;  %v1192_v6 = vpop.xlane.xlu0 %1191 }
 0x3af   : > { %v2418_v35 = vpop.eup %2417 }
 0x3b0   : > { %v1177_v52 = vpop.xlane.xlu1 %1176  ;;  %v1260_v30 = vmul.f32 %v2418_v35, %v3350_v42 }
 0x3b1   : > { %2419 = vrcp.f32 %v1177_v52 }
 0x3b2   : > { %2421 = vrcp.f32 %v1192_v6  ;;  %v1292_v9 = vpack.c.bf16 %v1260_v30, %v1260_v30 }
 0x3b3   : > { %v1399_v19 = vpop.f32.mrf.mxu3 }
 0x3b4   : > { %v1374_v14 = vpop.f32.mrf.mxu2  ;;  %v1710_v31 = vpack.c.bf16 %v1399_v19, %v1399_v19  ;;  %v1556_v36 = vunpack.c.l.b16 %v1292_v9 }
 0x3b5   : > { %v1708_v13 = vpack.c.bf16 %v1374_v14, %v1374_v14 }
 0x3b6   : > { %1743 = vst.msk [vmem:[#allocation2 + $0x18] sm:$0xf] %vm1736_vm3, %v1710_v31 }
 0x3b7   : > { %v2420_v22 = vpop.eup %2419  ;;  %1741 = vst.msk [vmem:[#allocation2 + $0x10] sm:$0xf] %vm1736_vm3, %v1708_v13 }
 0x3b8   : > { %v1261_v40 = vmul.f32 %v2420_v22, %v3359_v21  ;;  %v1180_v54 = vpop.xlane.xlu2 %1179  ;;  %v1195_v10 = vpop.xlane.xlu1 %1194 }
 0x3b9   : > { %v2422_v32 = vpop.eup %2421  ;;  %2423 = vrcp.f32 %v1195_v10 }
 0x3ba   : > { %v1293_v58 = vpack.c.bf16 %v1261_v40, %v1261_v40  ;;  %v1266_v27 = vmul.f32 %v2422_v32, %v3353_v47 }
 0x3bb   : > { %v1401_v63 = vpop.f32.mrf.mxu3 }
 0x3bc   : > { %v1557_v42 = vunpack.c.l.b16 %v1293_v58  ;;  %v1376_v0 = vpop.f32.mrf.mxu2  ;;  %v1711_v60 = vpack.c.bf16 %v1401_v63, %v1401_v63  ;;  %v1298_v57 = vpack.c.bf16 %v1266_v27, %v1266_v27 }
 0x3bd   : > { %v1709_v44 = vpack.c.bf16 %v1376_v0, %v1376_v0 }
 0x3be   : > { %v1558_v33 = vpack.c.b16 %v1557_v42, %v1556_v36  ;;  %1744 = vst.msk [vmem:[#allocation2 + $0x1c] sm:$0xf] %vm1736_vm3, %v1711_v60  ;;  %v1631_v16 = vunpack.c.l.b16 %v1298_v57 }
 0x3bf   : > { %1742 = vst.msk [vmem:[#allocation2 + $0x14] sm:$0xf] %vm1736_vm3, %v1709_v44  ;;  %v2424_v45 = vpop.eup %2423 }
 0x3c0   : > { %v1635_v21 = vpop.permute.xlu2 %1634  ;;  %v1198_v48 = vpop.xlane.xlu1 %1197  ;;  %2149 = vmatmul.msk.bf16.vlgmr.msra.gmra.mxu2 %vm919_vm2, %v1558_v33  ;;  %v1267_v3 = vmul.f32 %v2424_v45, %v3365_v4 }
 0x3c1   : > { %1647 = vmatpush.bf16.msrb.mxu1 %v1635_v21  ;;  %2425 = vrcp.f32 %v1198_v48  ;;  %v1183_v53 = vpop.xlane.xlu0 %1182 }
 0x3c2   : > { %v1299_v12 = vpack.c.bf16 %v1267_v3, %v1267_v3 }
 0x3c4   : > { %v1632_v29 = vunpack.c.l.b16 %v1299_v12 }
 0x3c6   : > { %v1633_v47 = vpack.c.b16 %v1632_v29, %v1631_v16 }
 0x3c7   : > { %v2426_v50 = vpop.eup %2425 }
 0x3c8   : > { %v1201_v37 = vpop.xlane.xlu1 %1200  ;;  %2152 = vmatmul.msk.bf16.vlgmr.msrb.gmra.mxu1 %vm919_vm2, %v1633_v47  ;;  %v1268_v39 = vmul.f32 %v2426_v50, %v3375_v17 }
 0x3c9   : > { %2427 = vrcp.f32 %v1201_v37 }
 0x3ca   : > { %2429 = vrcp.f32 %v1183_v53  ;;  %v1300_v28 = vpack.c.bf16 %v1268_v39, %v1268_v39 }
 0x3cb   : > { %2431 = vrcp.f32 %v1180_v54 }
 0x3cc   : > { %v1656_v23 = vunpack.c.l.b16 %v1300_v28 }
 0x3cf   : > { %v2428_v43 = vpop.eup %2427 }
 0x3d0   : > { %v1269_v4 = vmul.f32 %v2428_v43, %v3383_v61  ;;  %v2430_v15 = vpop.eup %2429 }
 0x3d1   : > { %v2432_v5 = vpop.eup %2431  ;;  %v1263_v8 = vmul.f32 %v2430_v15, %v3377_v51 }
 0x3d2   : > { %v1301_v56 = vpack.c.bf16 %v1269_v4, %v1269_v4  ;;  %v1262_v38 = vmul.f32 %v2432_v5, %v3368_v7 }
 0x3d3   : > { %v1660_v2 = vpop.permute.xlu0 %1659  ;;  %v1295_v17 = vpack.c.bf16 %v1263_v8, %v1263_v8 }
 0x3d4   : > { %v1657_v24 = vunpack.c.l.b16 %v1301_v56  ;;  %1672 = vmatpush.bf16.msrb.mxu2 %v1660_v2  ;;  %v1294_v59 = vpack.c.bf16 %v1262_v38, %v1262_v38 }
 0x3d5   : > { %v1582_v34 = vunpack.c.l.b16 %v1295_v17 }
 0x3d6   : > { %v1658_v55 = vpack.c.b16 %v1657_v24, %v1656_v23  ;;  %v1581_v46 = vunpack.c.l.b16 %v1294_v59  ;;  %v2198_v59 = vld [vmem:[#allocation8 + $0x8] sm:$0xff] }
 0x3d7   : > { %1934 = vmatpush.bf16.msra.mxu0 %v2198_v59 }
 0x3d8   : > { %2153 = vmatmul.msk.bf16.vlgmr.msrb.gmra.mxu2 %vm919_vm2, %v1658_v55  ;;  %v1583_v49 = vpack.c.b16 %v1582_v34, %v1581_v46  ;;  %v2197_v34 = vld [vmem:[#allocation8] sm:$0xff] }
 0x3db   : > { %v1685_v61 = vpop.permute.xlu0 %1684  ;;  %1935 = vmatpush.bf16.msra.mxu0 %v2197_v34 }
 0x3e0   : > { %v1585_v41 = vpop.permute.xlu1 %1584 }
 0x3e1   : > { %1597 = vmatpush.bf16.msra.mxu3 %v1585_v41 }
 0x3e4   : > { %2150 = vmatmul.msk.bf16.vlgmr.msra.gmra.mxu3 %vm919_vm2, %v1583_v49 }
 0x3e5   : > { %1697 = vmatpush.bf16.msrb.mxu3 %v1685_v61 }
 0x3e9   : > { %v1449_v6 = vpop.f32.mrf.mxu1 }
 0x3ea   : > { %v1714_v42 = vpack.c.bf16 %v1449_v6, %v1449_v6 }
 0x3f1   : > { %v1451_v54 = vpop.f32.mrf.mxu1 }
 0x3f2   : > { %v1715_v27 = vpack.c.bf16 %v1451_v54, %v1451_v54 }
 0x3f9   : > { %v1204_v20 = vpop.xlane.xlu2 %1203 }
 0x3fa   : > { %2433 = vrcp.f32 %v1204_v20 }
 0x400   : > { %v2434_v18 = vpop.eup %2433 }
 0x401   : > { %v1270_v52 = vmul.f32 %v2434_v18, %v3406_v62 }
 0x403   : > { %v1302_v19 = vpack.c.bf16 %v1270_v52, %v1270_v52 }
 0x405   : > { %v1424_v1 = vpop.f32.mrf.mxu0  ;;  %v1681_v13 = vunpack.c.l.b16 %v1302_v19 }
 0x406   : > { %v1712_v51 = vpack.c.bf16 %v1424_v1, %v1424_v1 }
 0x408   : > { %1753 = vrot.lane.b32.xlu0 %v1712_v51, %s2676_s9 }
 0x40b   : > { %v1207_v7 = vpop.xlane.xlu1 %1206 }
 0x40c   : > { %2435 = vrcp.f32 %v1207_v7 }
 0x40d   : > { %v1426_v11 = vpop.f32.mrf.mxu0 }
 0x40e   : > { %v1713_v26 = vpack.c.bf16 %v1426_v11, %v1426_v11 }
 0x410   : > { %1755 = vrot.lane.b32.xlu0 %v1713_v26, %s2676_s9 }
 0x412   : > { %v2436_v35 = vpop.eup %2435 }
 0x413   : > { %v1271_v30 = vmul.f32 %v2436_v35, %v3421_v25  ;;  %v1474_v60 = vpop.f32.mrf.mxu2 }
 0x414   : > { %v1716_v57 = vpack.c.bf16 %v1474_v60, %v1474_v60 }
 0x415   : > { %v1303_v14 = vpack.c.bf16 %v1271_v30, %v1271_v30  ;;  %v1524_v31 = vpop.f32.mrf.mxu0 }
 0x416   : > { %v1720_v9 = vpack.c.bf16 %v1524_v31, %v1524_v31 }
 0x417   : > { %v1682_v22 = vunpack.c.l.b16 %v1303_v14 }
 0x418   : > { %1794 = vrot.lane.b32.xlu0 %v1720_v9, %s2677_s7 }
 0x419   : > { %v1683_v40 = vpack.c.b16 %v1682_v22, %v1681_v13 }
 0x41b   : > { %2154 = vmatmul.msk.bf16.vlgmr.msrb.gmra.mxu3 %vm919_vm2, %v1683_v40  ;;  %v1476_v44 = vpop.f32.mrf.mxu2 }
 0x41c   : > { %v1717_v29 = vpack.c.bf16 %v1476_v44, %v1476_v44 }
 0x41d   : > { %v1526_v62 = vpop.f32.mrf.mxu0  ;;  %v1549_v32 = vpop.f32.mrf.mxu1 }
 0x41e   : > { %v1721_v10 = vpack.c.bf16 %v1526_v62, %v1526_v62  ;;  %v1722_v63 = vpack.c.bf16 %v1549_v32, %v1549_v32 }
 0x420   : > { %1796 = vrot.lane.b32.xlu2 %v1721_v10, %s2677_s7 }
 0x425   : > { %v1624_v58 = vpop.f32.mrf.mxu0  ;;  %v1551_v33 = vpop.f32.mrf.mxu1 }
 0x426   : > { %v1728_v25 = vpack.c.bf16 %v1624_v58, %v1624_v58  ;;  %v1723_v45 = vpack.c.bf16 %v1551_v33, %v1551_v33 }
 0x428   : > { %1835 = vrot.lane.b32.xlu0 %v1728_v25, %s2678_s11  ;;  %1798 = vrot.lane.b32.xlu2 %v1722_v63, %s2677_s7 }
 0x42b   : > { %v1499_v50 = vpop.f32.mrf.mxu3 }
 0x42c   : > { %v1718_v53 = vpack.c.bf16 %v1499_v50, %v1499_v50 }
 0x42d   : > { %v1626_v36 = vpop.f32.mrf.mxu0 }
 0x42e   : > { %v1729_v0 = vpack.c.bf16 %v1626_v36, %v1626_v36  ;;  %v2308_v36 = vld [vmem:[#allocation9] ss:$0 sm:$0xff] }
 0x430   : > { %1757 = vrot.lane.b32.xlu0 %v1714_v42, %s2676_s9  ;;  %1837 = vrot.lane.b32.xlu1 %v1729_v0, %s2678_s11 }
 0x433   : > { %v1501_v4 = vpop.f32.mrf.mxu3 }
 0x434   : > { %v1719_v15 = vpack.c.bf16 %v1501_v4, %v1501_v4 }
 0x438   : > { %1759 = vrot.lane.b32.xlu0 %v1715_v27, %s2676_s9 }
 0x440   : > { %1800 = vrot.lane.b32.xlu0 %v1723_v45, %s2677_s7 }
 0x443   : > { %v1574_v21 = vpop.f32.mrf.mxu2 }
 0x444   : > { %v1724_v39 = vpack.c.bf16 %v1574_v21, %v1574_v21 }
 0x445   : > { %v1649_v48 = vpop.f32.mrf.mxu1 }
 0x446   : > { %v1730_v3 = vpack.c.bf16 %v1649_v48, %v1649_v48 }
 0x448   : > { %1761 = vrot.lane.b32.xlu0 %v1716_v57, %s2676_s9  ;;  %1839 = vrot.lane.b32.xlu2 %v1730_v3, %s2678_s11 }
 0x44b   : > { %v1576_v12 = vpop.f32.mrf.mxu2 }
 0x44c   : > { %v1725_v47 = vpack.c.bf16 %v1576_v12, %v1576_v12 }
 0x44d   : > { %v1651_v16 = vpop.f32.mrf.mxu1 }
 0x44e   : > { %v1731_v37 = vpack.c.bf16 %v1651_v16, %v1651_v16 }
 0x450   : > { %1804 = vrot.lane.b32.xlu0 %v1725_v47, %s2677_s7  ;;  %1763 = vrot.lane.b32.xlu2 %v1717_v29, %s2676_s9 }
 0x451   : > { %1841 = vrot.lane.b32.xlu1 %v1731_v37, %s2678_s11 }
 0x458   : > { %1765 = vrot.lane.b32.xlu0 %v1718_v53, %s2676_s9 }
 0x459   : > { %1802 = vrot.lane.b32.xlu1 %v1724_v39, %s2677_s7 }
 0x45b   : > { %v1674_v43 = vpop.f32.mrf.mxu2 }
 0x45c   : > { %v1732_v28 = vpack.c.bf16 %v1674_v43, %v1674_v43 }
 0x45e   : > { %1843 = vrot.lane.b32.xlu2 %v1732_v28, %s2678_s11 }
 0x463   : > { %v1676_v56 = vpop.f32.mrf.mxu2 }
 0x464   : > { %v1733_v23 = vpack.c.bf16 %v1676_v56, %v1676_v56 }
 0x466   : > { %1767 = vrot.lane.b32.xlu2 %v1719_v15, %s2676_s9  ;;  %1845 = vrot.lane.b32.xlu1 %v1733_v23, %s2678_s11 }
 0x467   : > { %v1599_v24 = vpop.f32.mrf.mxu3 }
 0x468   : > { %v1726_v2 = vpack.c.bf16 %v1599_v24, %v1599_v24 }
 0x46e   : > { %1806 = vrot.lane.b32.xlu1 %v1726_v2, %s2677_s7 }
 0x46f   : > { %v1601_v5 = vpop.f32.mrf.mxu3 }
 0x470   : > { %v1727_v8 = vpack.c.bf16 %v1601_v5, %v1601_v5 }
 0x472   : > { %1808 = vrot.lane.b32.xlu0 %v1727_v8, %s2677_s7  ;;  %s2607_s7 = scalar_lea.hbm %s3558_s6, 128 }
 0x473   : > { %p2609_p9 = scmp.lt.s32.totalorder %s2607_s7, %s2603_s25 }
 0x475   : > { %p2610_p2 = por %p2609_p9, %p2608_p11 }
 0x477   : > { %p2611_p10 = pnand %p2610_p2, %p2606_p8 }
 0x47a   : > { %v1754_v55 = vpop.permute.xlu0 %1753  ;;  %v1797_v17 = vpop.permute.xlu2 %1796 }
 0x47b   : > { %1778 = vst.msk [vmem:[#allocation2] sm:$0xf] %vm1777_vm4, %v1754_v55 }
 0x482   : > { %v1756_v38 = vpop.permute.xlu0 %1755  ;;  %v1799_v41 = vpop.permute.xlu2 %1798 }
 0x483   : > { %1779 = vst.msk [vmem:[#allocation2 + $0x4] sm:$0xf] %vm1777_vm4, %v1756_v38 }
 0x484   : > { %1820 = vst.msk [vmem:[#allocation2 + $0x4] sm:$0xf] %vm1818_vm5, %v1797_v17 }
 0x48a   : > { %v1795_v46 = vpop.permute.xlu0 %1794 }
 0x48b   : > { %1819 = vst.msk [vmem:[#allocation2] sm:$0xf] %vm1818_vm5, %v1795_v46 }
 0x49a   : > { %v1836_v61 = vpop.permute.xlu0 %1835 }
 0x49b   : > { %1860 = vst.msk [vmem:[#allocation2] sm:$0xf] %vm1859_vm6, %v1836_v61 }
 0x49e   : > { %v1699_v49 = vpop.f32.mrf.mxu3 }
 0x49f   : > { %v1734_v20 = vpack.c.bf16 %v1699_v49, %v1699_v49 }
 0x4a1   : > { %1847 = vrot.lane.b32.xlu2 %v1734_v20, %s2678_s11 }
 0x4a2   : > { %v1838_v1 = vpop.permute.xlu1 %1837  ;;  %v1840_v51 = vpop.permute.xlu2 %1839 }
 0x4a3   : > { %1861 = vst.msk [vmem:[#allocation2 + $0x4] sm:$0xf] %vm1859_vm6, %v1838_v1  ;;  %v1758_v7 = vpop.permute.xlu0 %1757 }
 0x4a4   : > { %1780 = vst.msk [vmem:[#allocation2 + $0x8] sm:$0xf] %vm1777_vm4, %v1758_v7 }
 0x4a5   : > { %1821 = vst.msk [vmem:[#allocation2 + $0x8] sm:$0xf] %vm1818_vm5, %v1799_v41 }
 0x4a6   : > { %v1701_v18 = vpop.f32.mrf.mxu3  ;;  %1862 = vst.msk [vmem:[#allocation2 + $0x8] sm:$0xf] %vm1859_vm6, %v1840_v51 }
 0x4a7   : > { %v1735_v11 = vpack.c.bf16 %v1701_v18, %v1701_v18 }
 0x4a9   : > { %1849 = vrot.lane.b32.xlu1 %v1735_v11, %s2678_s11 }
 0x4aa   : > { %v1764_v26 = vpop.permute.xlu2 %1763  ;;  %v2193_v52 = vld [vmem:[#allocation2] sm:$0xff] }
 0x4ab   : > { %1783 = vst.msk [vmem:[#allocation2 + $0x14] sm:$0xf] %vm1777_vm4, %v1764_v26  ;;  %v1760_v35 = vpop.permute.xlu0 %1759  ;;  %2179 = vmatmul.msk.bf16.vlgmr.msra.gmra.mxu0 %vm372_vm0, %v2193_v52 }
 0x4ac   : > { %1781 = vst.msk [vmem:[#allocation2 + $0xc] sm:$0xf] %vm1777_vm4, %v1760_v35 }
 0x4b3   : > { %v1801_v6 = vpop.permute.xlu0 %1800 }
 0x4b4   : > { %1822 = vst.msk [vmem:[#allocation2 + $0xc] sm:$0xf] %vm1818_vm5, %v1801_v6 }
 0x4b8   : > { %v1844_v19 = vpop.permute.xlu2 %1843 }
 0x4bb   : > { %v1762_v30 = vpop.permute.xlu0 %1761 }
 0x4bc   : > { %1782 = vst.msk [vmem:[#allocation2 + $0x10] sm:$0xf] %vm1777_vm4, %v1762_v30 }
 0x4c0   : > { %v1768_v14 = vpop.permute.xlu2 %1767 }
 0x4c1   : > { %1785 = vst.msk [vmem:[#allocation2 + $0x1c] sm:$0xf] %vm1777_vm4, %v1768_v14 }
 0x4c3   : > { %v1842_v31 = vpop.permute.xlu1 %1841  ;;  %v1805_v13 = vpop.permute.xlu0 %1804 }
 0x4c4   : > { %1863 = vst.msk [vmem:[#allocation2 + $0xc] sm:$0xf] %vm1859_vm6, %v1842_v31 }
 0x4c5   : > { %1824 = vst.msk [vmem:[#allocation2 + $0x14] sm:$0xf] %vm1818_vm5, %v1805_v13 }
 0x4cb   : > { %v1803_v22 = vpop.permute.xlu1 %1802  ;;  %v1766_v9 = vpop.permute.xlu0 %1765  ;;  %v2194_v40 = vld [vmem:[#allocation2 + $0x8] sm:$0xff] }
 0x4cc   : > { %1823 = vst.msk [vmem:[#allocation2 + $0x10] sm:$0xf] %vm1818_vm5, %v1803_v22  ;;  %2180 = vmatmul.msk.bf16.gmra.mxu0 %vm372_vm0, %v2194_v40 }
 0x4cd   : > { %1864 = vst.msk [vmem:[#allocation2 + $0x10] sm:$0xf] %vm1859_vm6, %v1844_v19 }
 0x4ce   : > { %1784 = vst.msk [vmem:[#allocation2 + $0x18] sm:$0xf] %vm1777_vm4, %v1766_v9 }
 0x4d8   : > { %v1846_v54 = vpop.permute.xlu1 %1845 }
 0x4d9   : > { %1865 = vst.msk [vmem:[#allocation2 + $0x14] sm:$0xf] %vm1859_vm6, %v1846_v54 }
 0x4e0   : > { %v1807_v62 = vpop.permute.xlu1 %1806  ;;  %v2195_v10 = vld [vmem:[#allocation2 + $0x10] sm:$0xff] }
 0x4e1   : > { %1825 = vst.msk [vmem:[#allocation2 + $0x18] sm:$0xf] %vm1818_vm5, %v1807_v62  ;;  %2181 = vmatmul.msk.bf16.gmra.mxu0 %vm372_vm0, %v2195_v10 }
 0x4e4   : > { %v1809_v32 = vpop.permute.xlu0 %1808 }
 0x4e5   : > { %1826 = vst.msk [vmem:[#allocation2 + $0x1c] sm:$0xf] %vm1818_vm5, %v1809_v32 }
 0x4fb   : > { %v1848_v58 = vpop.permute.xlu2 %1847 }
 0x4fc   : > { %1866 = vst.msk [vmem:[#allocation2 + $0x18] sm:$0xf] %vm1859_vm6, %v1848_v58 }
 0x51b   : > { %v1850_v63 = vpop.permute.xlu1 %1849 }
 0x51c   : > { %1867 = vst.msk [vmem:[#allocation2 + $0x1c] sm:$0xf] %vm1859_vm6, %v1850_v63 }
 0x523   : > { %v2196_v25 = vld [vmem:[#allocation2 + $0x18] sm:$0xff] }
 0x524   : > { %2182 = vmatmul.msk.bf16.gmra.mxu0 %vm372_vm0, %v2196_v25 }
 0x528   : > { %v1937_v42 = vpop.f32.mrf.mxu0 }
 0x529   : > { %v1938_v0 = vadd.f32 %v2308_v36, %v1937_v42 }
 0x52b   : > { %1957 = vst.msk [vmem:[%s336_s10] sm:$0xff] %vm372_vm0, %v1938_v0 }
 0x530   : > { %v1939_v60 = vpop.f32.mrf.mxu0 }
 0x531   : > { %v1940_v27 = vadd.f32 %v2308_v36, %v1939_v60 }
 0x533   : > { %1958 = vst.msk [vmem:[%s336_s10 + $0x8] sm:$0xff] %vm372_vm0, %v1940_v27 }
 0x549   : > { %v1942_v44 = vpop.f32.mrf.mxu0 }
 0x54a   : > { %v1943_v33 = vadd.f32 %v2308_v36, %v1942_v44 }
 0x54c   : > { %1959 = vst.msk [vmem:[%s336_s10 + $0x10] sm:$0xff] %vm372_vm0, %v1943_v33 }
 0x551   : > { %v1944_v45 = vpop.f32.mrf.mxu0 }
 0x552   : > { %v1945_v21 = vadd.f32 %v2308_v36, %v1944_v45 }
 0x554   : > { %1960 = vst.msk [vmem:[%s336_s10 + $0x18] sm:$0xff] %vm372_vm0, %v1945_v21 }
 0x55e   : > { %v1947_v48 = vpop.f32.mrf.mxu0 }
 0x55f   : > { %v1948_v57 = vadd.f32 %v2308_v36, %v1947_v48 }
 0x561   : > { %1961 = vst.msk [vmem:[%s336_s10 + $0x20] sm:$0xff] %vm372_vm0, %v1948_v57 }
 0x566   : > { %v1949_v3 = vpop.f32.mrf.mxu0 }
 0x567   : > { %v1950_v12 = vadd.f32 %v2308_v36, %v1949_v3 }
 0x569   : > { %1962 = vst.msk [vmem:[%s336_s10 + $0x28] sm:$0xff] %vm372_vm0, %v1950_v12 }
 0x5a1   : > { %v1952_v16 = vpop.f32.mrf.mxu0 }
 0x5a2   : > { %v1953_v29 = vadd.f32 %v2308_v36, %v1952_v16 }
 0x5a4   : > { %1963 = vst.msk [vmem:[%s336_s10 + $0x30] sm:$0xff] %vm372_vm0, %v1953_v29 }
 0x5a9   : > { %v1954_v47 = vpop.f32.mrf.mxu0 }
 0x5aa   : > { %v1955_v37 = vadd.f32 %v2308_v36, %v1954_v47 }
 0x5ac   : > { %1964 = vst.msk [vmem:[%s336_s10 + $0x38] sm:$0xff] %vm372_vm0, %v1955_v37 }
 0x5ad   : > { %2614 = shalt.err (!%p2611_p10)
}
 0x5ae   : > { %s2679_s29 = smov 128  }
 0x5af   : > { %2225 = dma.vmem_to_hbm [thread:$0]  (%p2805_p5), %s1980_s8, 1024, %s1982_s12, %s1966_s13, %s2679_s29, %s2679_s29, %s2676_s9  }
 0x5b0 PF: > { %s1996_s10 = sand.u32 1, %s2649_s21   ;;  %p3569_p12 = scmp.ge.s32.totalorder %s2661_s24, 2 }
 0x5b1   : > { %s1997_s17 = scalar_lea.sflag [#allocation5], %s1996_s10 }
 0x5b2   : > { %p2245_p13 = pnand %p3569_p12, %p2750_p6 }
 0x5b4   : > { %p2246_p0 = pneg %p2245_p13 }
 0x5b6   : > { %2644 = dma.done.wait (%p2246_p0), %s1997_s17, 1024  }
 0x5b7   : > { %2646 = vsyncadd (%p2246_p0), %s1997_s17, 4294966272  ;;  %p21_p3 = scmp.ge.s32.totalorder %s2792_s18, 4   ;;  %s3570_s21 = smov %s2653_s22 }
 0x5b8   : > { %s3571_s22 = smov %s2657_s23  ;;  %s3572_s23 = smov %s2801_s15 }
 0x5b9   : > { %s3573_s24 = smov %s2792_s18  ;;  %23 = sbr.rel (!%p21_p3) target bundleno = 7 (0x7), region = 105 }
 0x5be   :  { %2003 = vsyncpa [#allocation4], 1 }
 0x5bf   :  { %2005 = vsyncpa [#allocation4 + $0x1], 1 }
 0x5c0   :  { %2006 = vsyncpa [#allocation7], 1 }
 0x5c1   :  { %2007 = vsyncpa [#allocation10], 1 }
 0x5c2   :  { %2008 = vsyncpa [#allocation5], 1 }
 0x5c3   :  { %2010 = vsyncpa [#allocation5 + $0x1], 1 }

</bundles_post_ra>
